<compile_context>
chip_gen: v7x
topology: tpu7x:2x2x1
jax: 0.10.0
libtpu: 0.0.40
codegen_flags: <defaults>
</compile_context>

<pallas_src>
import functools

import jax
import jax.numpy as jnp
from jax.experimental import pallas as pl
from jax.experimental.pallas import tpu as pltpu


_NEG_BIG = -1e30  # padded-vocab bias: exp() underflows to exactly 0 in f32


def _round_up(x, m):
    return (x + m - 1) // m * m


def gcnn_kernel(x_ref, halo_ref, whg_ref, bhg_ref, wfc_ref, bfc_ref, o_ref, *,
                KH, Cp, TS):
    # x_ref    : (TS, Ep)        bf16  -- one batch's seq tile of embedded tokens
    # halo_ref : (8, Ep)         bf16  -- 8 rows preceding the tile (same batch;
    #                                     zeros for the first tile => causal pad)
    # whg_ref  : (KH, Ep, 2*Cp)  bf16  -- per-tap fused [W_h | W_g] conv weights
    # bhg_ref  : (1, 2*Cp)       f32
    # wfc_ref  : (Cp, VP)        bf16  -- fc weight, vocab padded to lane width
    # bfc_ref  : (1, VP)         f32   -- padded vocab columns hold -1e30
    # o_ref    : (TS, VP)        bf16  -- softmax probabilities
    x = x_ref[...]

    # Causal conv = KH shifted-tap matmuls, accumulated in f32 on the MXU.
    acc = jnp.dot(x, whg_ref[0], preferred_element_type=jnp.float32)
    if KH > 1:
        # Shifted views are built in f32 (robust relayout path); the f32<->bf16
        # round trip is exact so results match the direct bf16 path.
        x32 = x.astype(jnp.float32)
        halo32 = halo_ref[...].astype(jnp.float32)
        for d in range(1, KH):
            # row j of xs == embed row (tile_start + j - d); first d rows come
            # from the halo (or causal zeros).
            xs = jnp.concatenate([halo32[8 - d:, :], x32[:TS - d, :]], axis=0)
            acc = acc + jnp.dot(xs.astype(jnp.bfloat16), whg_ref[d],
                                preferred_element_type=jnp.float32)
    hg = acc + bhg_ref[...]

    # Tile-aligned gate split (Cp is a multiple of 128 -> free views).
    h = hg[:, :Cp]
    g = hg[:, Cp:]
    # TODO(synk): dropout (p=0.2, training mode) not implemented; identity in eval.
    gated = h * jax.nn.sigmoid(g)                              # (TS, Cp) f32

    # Final Linear: channel -> padded vocab (padded channels are zero rows).
    logits = jnp.dot(gated.astype(wfc_ref.dtype), wfc_ref[...],
                     preferred_element_type=jnp.float32) + bfc_ref[...]

    # Softmax over the vocab dim.  Kept in f32 (exact zero on -1e30 lanes and
    # v5e has no bf16 EUP); the divide goes to the EUP via approx reciprocal.
    m = jnp.max(logits, axis=-1, keepdims=True)
    e = jnp.exp(logits - m)
    denom = jnp.sum(e, axis=-1, keepdims=True)
    probs = e * pl.reciprocal(denom, approx=True)
    o_ref[...] = probs.astype(o_ref.dtype)


def gated_cnn_forward(tokens, embedding, w_conv_h, b_conv_h, w_conv_g, b_conv_g,
                      w_fc, b_fc, kernel_height, *, seq_tile=512):
    """tokens: (B, S) int32. Returns (B, S, V) bfloat16 softmax probabilities."""
    B, S = tokens.shape
    V, E = embedding.shape
    C = w_conv_h.shape[0]
    KH = kernel_height
    assert KH - 1 <= 8, "halo buffer carries at most 8 rows (KH <= 9)"

    Ep = _round_up(E, 128)       # lane-dense embed dim
    Cp = _round_up(C, 128)       # lane-dense per-gate channel dim
    VP = _round_up(V, 128)       # lane-dense padded vocab

    # ---- VMEM budget (adapts to v5e/v6e 128 MiB vs v7x 64 MiB) ----
    try:
        vmem_cap = int(getattr(pltpu.get_tpu_info(), "vmem_capacity_bytes",
                               64 * 1024 * 1024))
    except Exception:
        vmem_cap = 64 * 1024 * 1024
    vmem_limit = min(int(vmem_cap * 0.85), 128 * 1024 * 1024)

    # Pick the seq tile: as large as possible, multiple of 8, fits ~70% of the
    # VMEM limit, and leaves >= 2 grid steps (v7x megacore).
    def _footprint(t):
        return (2 * t * Ep * 2            # x block, double buffered, bf16
                + 2 * 8 * Ep * 2          # halo block
                + 2 * t * VP * 2          # output block, bf16
                + 2 * (KH * Ep * 2 * Cp * 2 + Cp * VP * 2 + (2 * Cp + VP) * 4)
                + 2 * t * Ep * 4          # in-kernel f32 shifted-view temps
                + t * 2 * Cp * 4          # acc
                + 3 * t * VP * 4)         # logits / exp temporaries
    TS = max(8, min(_round_up(seq_tile, 8), _round_up(S, 8)))
    while TS > 8 and _footprint(TS) > int(0.7 * vmem_limit):
        TS = max(8, ((TS // 2) // 8) * 8)
    while TS > 8 and B * ((S + TS - 1) // TS) < 2:
        TS = max(8, ((TS // 2) // 8) * 8)

    S_pad = _round_up(S, TS)
    nst = S_pad // TS

    # ---- glue (plain JAX): bf16 embedding gather.  NO im2col buffer. ----
    emb_tab = jnp.pad(embedding, ((0, 0), (0, Ep - E))).astype(jnp.bfloat16)
    x_emb = jnp.take(emb_tab, tokens, axis=0)                   # (B, S, Ep) bf16
    x_emb = jnp.pad(x_emb, ((0, 0), (0, S_pad - S), (0, 0)))    # (B, S_pad, Ep)

    # 8-row halo preceding each seq tile (zeros for each batch's first tile).
    xr = x_emb.reshape(B, nst, TS, Ep)
    halo = jnp.concatenate(
        [jnp.zeros((B, 1, 8, Ep), x_emb.dtype), xr[:, :-1, TS - 8:, :]],
        axis=1).reshape(B, nst * 8, Ep)

    # Per-tap fused conv weights: tap d multiplies embed[s - d].
    wh = w_conv_h[:, 0]                                         # (C, KH, E)
    wg = w_conv_g[:, 0]
    taps = []
    for d in range(KH):
        kh = KH - 1 - d
        tap = jnp.zeros((Ep, 2 * Cp), jnp.float32)
        tap = tap.at[:E, :C].set(jnp.transpose(wh[:, kh, :]))
        tap = tap.at[:E, Cp:Cp + C].set(jnp.transpose(wg[:, kh, :]))
        taps.append(tap)
    whg = jnp.stack(taps, axis=0).astype(jnp.bfloat16)          # (KH, Ep, 2Cp)
    bhg = jnp.zeros((1, 2 * Cp), jnp.float32)
    bhg = bhg.at[0, :C].set(b_conv_h).at[0, Cp:Cp + C].set(b_conv_g)

    wfc = jnp.zeros((Cp, VP), jnp.float32).at[:C, :V].set(jnp.transpose(w_fc))
    wfc = wfc.astype(jnp.bfloat16)
    bfc = jnp.full((1, VP), _NEG_BIG, jnp.float32).at[0, :V].set(b_fc)

    grid = (B, nst)
    kern = functools.partial(gcnn_kernel, KH=KH, Cp=Cp, TS=TS)

    def _call(single_buffer_weights):
        # Grid-invariant operands: request single buffering (reclaims VMEM,
        # critical on v7x).  Falls back to default pipelining if unsupported.
        wkw = ({"pipeline_mode": pl.Buffered(1)}
               if single_buffer_weights else {})
        in_specs = [
            pl.BlockSpec((None, TS, Ep), lambda b, j: (b, j, 0)),
            pl.BlockSpec((None, 8, Ep), lambda b, j: (b, j, 0)),
            pl.BlockSpec((KH, Ep, 2 * Cp), lambda b, j: (0, 0, 0), **wkw),
            pl.BlockSpec((1, 2 * Cp), lambda b, j: (0, 0), **wkw),
            pl.BlockSpec((Cp, VP), lambda b, j: (0, 0), **wkw),
            pl.BlockSpec((1, VP), lambda b, j: (0, 0), **wkw),
        ]
        out_specs = pl.BlockSpec((None, TS, VP), lambda b, j: (b, j, 0))
        fn = pl.pallas_call(
            kern,
            out_shape=jax.ShapeDtypeStruct((B, S_pad, VP), jnp.bfloat16),
            grid_spec=pltpu.PrefetchScalarGridSpec(
                num_scalar_prefetch=0, grid=grid,
                in_specs=in_specs, out_specs=out_specs),
            compiler_params=pltpu.CompilerParams(
                dimension_semantics=("parallel", "parallel"),
                vmem_limit_bytes=vmem_limit),
        )
        return fn(x_emb, halo, whg, bhg, wfc, bfc)

    try:
        out = jax.block_until_ready(_call(True))
    except Exception:
        out = jax.block_until_ready(_call(False))

    # Strip seq/vocab padding only when there is any (avoids an extra HBM pass).
    if S_pad == S and VP == V:
        return out
    return out[:, :S, :V]


def gated_cnn_reference(tokens, embedding, w_conv_h, b_conv_h, w_conv_g, b_conv_g,
                        w_fc, b_fc, kernel_height):
    """Pure-JAX f32 reference of the PyTorch forward (eval mode)."""
    B, S = tokens.shape
    V, E = embedding.shape
    C = w_conv_h.shape[0]
    KH = kernel_height
    embed = jnp.take(embedding, tokens, axis=0)
    embed_pad = jnp.pad(embed, ((0, 0), (KH - 1, 0), (0, 0)))
    windows = [embed_pad[:, t:t + S, :] for t in range(KH)]
    x_unf = jnp.concatenate(windows, axis=-1)                   # (B, S, KH*E)
    wh = jnp.transpose(w_conv_h.reshape(C, KH * E))
    wg = jnp.transpose(w_conv_g.reshape(C, KH * E))
    h = x_unf @ wh + b_conv_h
    g = x_unf @ wg + b_conv_g
    gated = h * jax.nn.sigmoid(g)
    logits = gated @ jnp.transpose(w_fc) + b_fc
    return jax.nn.softmax(logits, axis=-1)


if __name__ == "__main__":
    # parameter dict of the PyTorch module (small shapes)
    parameter = dict(vocab_size=32, embed_dim=32, channel_out=16,
                     kernel_height=3, max_seq=8)
    V = parameter["vocab_size"]
    E = parameter["embed_dim"]
    C = parameter["channel_out"]
    KH = parameter["kernel_height"]
    S = parameter["max_seq"]
    B = 2

    key = jax.random.PRNGKey(0)
    k_tok, k_emb, k_wh, k_bh, k_wg, k_bg, k_wfc, k_bfc = jax.random.split(key, 8)

    tokens = jax.random.randint(k_tok, (B, S), 0, V, dtype=jnp.int32)

    # Deterministic synthetic parameters (shapes match nn.Module.__init__).
    embedding = jax.random.normal(k_emb, (V, E), jnp.float32) * 0.1
    w_conv_h = jax.random.normal(k_wh, (C, 1, KH, E), jnp.float32) * 0.05
    b_conv_h = jax.random.normal(k_bh, (C,), jnp.float32) * 0.05
    w_conv_g = jax.random.normal(k_wg, (C, 1, KH, E), jnp.float32) * 0.05
    b_conv_g = jax.random.normal(k_bg, (C,), jnp.float32) * 0.05
    w_fc = jax.random.normal(k_wfc, (V, C), jnp.float32) * 0.05
    b_fc = jax.random.normal(k_bfc, (V,), jnp.float32) * 0.05

    out = gated_cnn_forward(tokens, embedding, w_conv_h, b_conv_h,
                            w_conv_g, b_conv_g, w_fc, b_fc, KH)
    out = jax.block_until_ready(out)

    ref = gated_cnn_reference(tokens, embedding, w_conv_h, b_conv_h,
                              w_conv_g, b_conv_g, w_fc, b_fc, KH)

    # sanity: shape (B, S, V), rows sum to 1, matches f32 reference
    # (loose tolerances: bf16 matmul operands, bf16 probs, approx reciprocal).
    out_f32 = out.astype(jnp.float32)
    assert out.shape == (B, S, V)
    assert jnp.allclose(jnp.sum(out_f32, axis=-1), 1.0, atol=1e-2)
    assert jnp.max(jnp.abs(out_f32 - ref)) < 2e-2
    print("KERNEL_OK")
</pallas_src>

<mosaic_0001>
module attributes {stable_mosaic.version = 11 : i64} {
  func.func @gcnn_kernel(%arg0: i32, %arg1: i32, %arg2: memref<1x8x128xbf16, #tpu.memory_space<vmem>>, %arg3: memref<1x8x128xbf16, #tpu.memory_space<vmem>>, %arg4: memref<3x128x256xbf16, #tpu.memory_space<vmem>>, %arg5: memref<1x256xf32, #tpu.memory_space<vmem>>, %arg6: memref<128x128xbf16, #tpu.memory_space<vmem>>, %arg7: memref<1x128xf32, #tpu.memory_space<vmem>>, %arg8: memref<1x8x128xbf16, #tpu.memory_space<vmem>>) attributes {dimension_semantics = [#tpu.dimension_semantics<parallel>, #tpu.dimension_semantics<parallel>], iteration_bounds = array<i64: 2, 1>, scalar_prefetch = 0 : i64, scratch_operands = 0 : i64, tpu.core_type = #tpu.core_type<tc>, window_params = [{transform_indices = @transform_0, window_bounds = array<i64: 1, 8, 128>}, {transform_indices = @transform_1, window_bounds = array<i64: 1, 8, 128>}, {pipeline_mode = #tpu.pipeline_mode<synchronous>, transform_indices = @transform_2, window_bounds = array<i64: 3, 128, 256>}, {pipeline_mode = #tpu.pipeline_mode<synchronous>, transform_indices = @transform_3, window_bounds = array<i64: 1, 256>}, {pipeline_mode = #tpu.pipeline_mode<synchronous>, transform_indices = @transform_4, window_bounds = array<i64: 128, 128>}, {pipeline_mode = #tpu.pipeline_mode<synchronous>, transform_indices = @transform_5, window_bounds = array<i64: 1, 128>}, {transform_indices = @transform_6, window_bounds = array<i64: 1, 8, 128>}]} {
    %c0 = arith.constant 0 : index
    %c0_0 = arith.constant 0 : index
    %c0_1 = arith.constant 0 : index
    %0 = vector.load %arg2[%c0, %c0_0, %c0_1] : memref<1x8x128xbf16, #tpu.memory_space<vmem>>, vector<1x8x128xbf16>
    %1 = vector.shape_cast %0 : vector<1x8x128xbf16> to vector<8x128xbf16>
    %c0_2 = arith.constant 0 : index
    %c0_3 = arith.constant 0 : index
    %c0_4 = arith.constant 0 : index
    %2 = vector.load %arg4[%c0_2, %c0_3, %c0_4] : memref<3x128x256xbf16, #tpu.memory_space<vmem>>, vector<1x128x256xbf16>
    %3 = vector.shape_cast %2 : vector<1x128x256xbf16> to vector<128x256xbf16>
    %cst = arith.constant dense<0.000000e+00> : vector<8x256xf32>
    %4 = tpu.matmul %1, %3, %cst {dimension_numbers = #tpu.dot_dimension_numbers<[1], [0], [0], [1], [0, 0, 1, 1], [], []>} : vector<8x128xbf16>, vector<128x256xbf16>, vector<8x256xf32> -> vector<8x256xf32>
    %5 = arith.extf %1 : vector<8x128xbf16> to vector<8x128xf32>
    %c0_5 = arith.constant 0 : index
    %c0_6 = arith.constant 0 : index
    %c0_7 = arith.constant 0 : index
    %6 = vector.load %arg3[%c0_5, %c0_6, %c0_7] : memref<1x8x128xbf16, #tpu.memory_space<vmem>>, vector<1x8x128xbf16>
    %7 = vector.shape_cast %6 : vector<1x8x128xbf16> to vector<8x128xbf16>
    %8 = arith.extf %7 : vector<8x128xbf16> to vector<8x128xf32>
    %9 = vector.extract_strided_slice %8 {offsets = [7, 0], sizes = [1, 128], strides = [1, 1]} : vector<8x128xf32> to vector<1x128xf32>
    %10 = vector.extract_strided_slice %5 {offsets = [0, 0], sizes = [7, 128], strides = [1, 1]} : vector<8x128xf32> to vector<7x128xf32>
    %11 = tpu.concatenate %9, %10 in 0 : vector<1x128xf32>, vector<7x128xf32> -> vector<8x128xf32>
    %12 = arith.truncf %11 : vector<8x128xf32> to vector<8x128xbf16>
    %c1 = arith.constant 1 : index
    %c0_8 = arith.constant 0 : index
    %c0_9 = arith.constant 0 : index
    %13 = vector.load %arg4[%c1, %c0_8, %c0_9] : memref<3x128x256xbf16, #tpu.memory_space<vmem>>, vector<1x128x256xbf16>
    %14 = vector.shape_cast %13 : vector<1x128x256xbf16> to vector<128x256xbf16>
    %cst_10 = arith.constant dense<0.000000e+00> : vector<8x256xf32>
    %15 = tpu.matmul %12, %14, %cst_10 {dimension_numbers = #tpu.dot_dimension_numbers<[1], [0], [0], [1], [0, 0, 1, 1], [], []>} : vector<8x128xbf16>, vector<128x256xbf16>, vector<8x256xf32> -> vector<8x256xf32>
    %16 = arith.addf %4, %15 : vector<8x256xf32>
    %17 = vector.extract_strided_slice %8 {offsets = [6, 0], sizes = [2, 128], strides = [1, 1]} : vector<8x128xf32> to vector<2x128xf32>
    %18 = vector.extract_strided_slice %5 {offsets = [0, 0], sizes = [6, 128], strides = [1, 1]} : vector<8x128xf32> to vector<6x128xf32>
    %19 = tpu.concatenate %17, %18 in 0 : vector<2x128xf32>, vector<6x128xf32> -> vector<8x128xf32>
    %20 = arith.truncf %19 : vector<8x128xf32> to vector<8x128xbf16>
    %c2 = arith.constant 2 : index
    %c0_11 = arith.constant 0 : index
    %c0_12 = arith.constant 0 : index
    %21 = vector.load %arg4[%c2, %c0_11, %c0_12] : memref<3x128x256xbf16, #tpu.memory_space<vmem>>, vector<1x128x256xbf16>
    %22 = vector.shape_cast %21 : vector<1x128x256xbf16> to vector<128x256xbf16>
    %cst_13 = arith.constant dense<0.000000e+00> : vector<8x256xf32>
    %23 = tpu.matmul %20, %22, %cst_13 {dimension_numbers = #tpu.dot_dimension_numbers<[1], [0], [0], [1], [0, 0, 1, 1], [], []>} : vector<8x128xbf16>, vector<128x256xbf16>, vector<8x256xf32> -> vector<8x256xf32>
    %24 = arith.addf %16, %23 : vector<8x256xf32>
    %c0_14 = arith.constant 0 : index
    %c0_15 = arith.constant 0 : index
    %25 = vector.load %arg5[%c0_14, %c0_15] : memref<1x256xf32, #tpu.memory_space<vmem>>, vector<1x256xf32>
    %26 = vector.broadcast %25 : vector<1x256xf32> to vector<8x256xf32>
    %27 = arith.addf %24, %26 : vector<8x256xf32>
    %28 = vector.extract_strided_slice %27 {offsets = [0, 0], sizes = [8, 128], strides = [1, 1]} : vector<8x256xf32> to vector<8x128xf32>
    %29 = vector.extract_strided_slice %27 {offsets = [0, 128], sizes = [8, 128], strides = [1, 1]} : vector<8x256xf32> to vector<8x128xf32>
    %30 = arith.negf %29 : vector<8x128xf32>
    %31 = math.exp %30 : vector<8x128xf32>
    %cst_16 = arith.constant 1.000000e+00 : f32
    %32 = vector.broadcast %cst_16 : f32 to vector<8x128xf32>
    %33 = arith.addf %32, %31 : vector<8x128xf32>
    %34 = arith.divf %32, %33 : vector<8x128xf32>
    %35 = arith.mulf %28, %34 : vector<8x128xf32>
    %36 = arith.truncf %35 : vector<8x128xf32> to vector<8x128xbf16>
    %c0_17 = arith.constant 0 : index
    %c0_18 = arith.constant 0 : index
    %37 = vector.load %arg6[%c0_17, %c0_18] : memref<128x128xbf16, #tpu.memory_space<vmem>>, vector<128x128xbf16>
    %cst_19 = arith.constant dense<0.000000e+00> : vector<8x128xf32>
    %38 = tpu.matmul %36, %37, %cst_19 {dimension_numbers = #tpu.dot_dimension_numbers<[1], [0], [0], [1], [0, 0, 1, 1], [], []>} : vector<8x128xbf16>, vector<128x128xbf16>, vector<8x128xf32> -> vector<8x128xf32>
    %c0_20 = arith.constant 0 : index
    %c0_21 = arith.constant 0 : index
    %39 = vector.load %arg7[%c0_20, %c0_21] : memref<1x128xf32, #tpu.memory_space<vmem>>, vector<1x128xf32>
    %40 = vector.broadcast %39 : vector<1x128xf32> to vector<8x128xf32>
    %41 = arith.addf %38, %40 : vector<8x128xf32>
    %cst_22 = arith.constant dense<0xFF800000> : vector<8xf32>
    %42 = vector.multi_reduction <maximumf>, %41, %cst_22 [1] : vector<8x128xf32> to vector<8xf32>
    %43 = vector.shape_cast %42 : vector<8xf32> to vector<8x1xf32>
    %44 = vector.broadcast %43 : vector<8x1xf32> to vector<8x128xf32>
    %45 = arith.subf %41, %44 : vector<8x128xf32>
    %46 = math.exp %45 : vector<8x128xf32>
    %cst_23 = arith.constant dense<0.000000e+00> : vector<8xf32>
    %47 = vector.multi_reduction <add>, %46, %cst_23 [1] : vector<8x128xf32> to vector<8xf32>
    %48 = vector.shape_cast %47 : vector<8xf32> to vector<8x1xf32>
    %49 = tpu.reciprocal %48 {approx = true} : vector<8x1xf32> -> vector<8x1xf32>
    %50 = vector.broadcast %49 : vector<8x1xf32> to vector<8x128xf32>
    %51 = arith.mulf %46, %50 : vector<8x128xf32>
    %52 = arith.truncf %51 : vector<8x128xf32> to vector<8x128xbf16>
    %c0_24 = arith.constant 0 : index
    %c0_25 = arith.constant 0 : index
    %c0_26 = arith.constant 0 : index
    %53 = vector.load %arg8[%c0_24, %c0_25, %c0_26] : memref<1x8x128xbf16, #tpu.memory_space<vmem>>, vector<1x8x128xbf16>
    %54 = vector.shape_cast %53 : vector<1x8x128xbf16> to vector<8x128xbf16>
    %55 = vector.shape_cast %52 : vector<8x128xbf16> to vector<1x8x128xbf16>
    tpu.vector_store %arg8[%c0_24, %c0_25, %c0_26], %55 {strides = array<i32>} : memref<1x8x128xbf16, #tpu.memory_space<vmem>>, vector<1x8x128xbf16>,
    return
  }
  func.func @transform_0(%arg0: i32, %arg1: i32) -> (i32, i32, i32) {
    %c0_i32 = arith.constant 0 : i32
    %c0_i32_0 = arith.constant 0 : i32
    return %arg0, %arg1, %c0_i32 : i32, i32, i32
  }
  func.func @transform_1(%arg0: i32, %arg1: i32) -> (i32, i32, i32) {
    %c0_i32 = arith.constant 0 : i32
    %c0_i32_0 = arith.constant 0 : i32
    return %arg0, %arg1, %c0_i32 : i32, i32, i32
  }
  func.func @transform_2(%arg0: i32, %arg1: i32) -> (i32, i32, i32) {
    %c0_i32 = arith.constant 0 : i32
    %c0_i32_0 = arith.constant 0 : i32
    %c0_i32_1 = arith.constant 0 : i32
    %c0_i32_2 = arith.constant 0 : i32
    return %c0_i32, %c0_i32_0, %c0_i32_1 : i32, i32, i32
  }
  func.func @transform_3(%arg0: i32, %arg1: i32) -> (i32, i32) {
    %c0_i32 = arith.constant 0 : i32
    %c0_i32_0 = arith.constant 0 : i32
    %c0_i32_1 = arith.constant 0 : i32
    return %c0_i32, %c0_i32_0 : i32, i32
  }
  func.func @transform_4(%arg0: i32, %arg1: i32) -> (i32, i32) {
    %c0_i32 = arith.constant 0 : i32
    %c0_i32_0 = arith.constant 0 : i32
    %c0_i32_1 = arith.constant 0 : i32
    return %c0_i32, %c0_i32_0 : i32, i32
  }
  func.func @transform_5(%arg0: i32, %arg1: i32) -> (i32, i32) {
    %c0_i32 = arith.constant 0 : i32
    %c0_i32_0 = arith.constant 0 : i32
    %c0_i32_1 = arith.constant 0 : i32
    return %c0_i32, %c0_i32_0 : i32, i32
  }
  func.func @transform_6(%arg0: i32, %arg1: i32) -> (i32, i32, i32) {
    %c0_i32 = arith.constant 0 : i32
    %c0_i32_0 = arith.constant 0 : i32
    return %arg0, %arg1, %c0_i32 : i32, i32, i32
  }
}

module attributes {stable_mosaic.version = 11 : i64} {
  func.func @gcnn_kernel(%arg0: i32, %arg1: i32, %arg2: memref<1x8x128xbf16, #tpu.memory_space<vmem>>, %arg3: memref<1x8x128xbf16, #tpu.memory_space<vmem>>, %arg4: memref<3x128x256xbf16, #tpu.memory_space<vmem>>, %arg5: memref<1x256xf32, #tpu.memory_space<vmem>>, %arg6: memref<128x128xbf16, #tpu.memory_space<vmem>>, %arg7: memref<1x128xf32, #tpu.memory_space<vmem>>, %arg8: memref<1x8x128xbf16, #tpu.memory_space<vmem>>) attributes {dimension_semantics = [#tpu.dimension_semantics<parallel>, #tpu.dimension_semantics<parallel>], iteration_bounds = array<i64: 2, 1>, scalar_prefetch = 0 : i64, scratch_operands = 0 : i64, tpu.core_type = #tpu.core_type<tc>, window_params = [{transform_indices = @transform_0, window_bounds = array<i64: 1, 8, 128>}, {transform_indices = @transform_1, window_bounds = array<i64: 1, 8, 128>}, {pipeline_mode = #tpu.pipeline_mode<synchronous>, transform_indices = @transform_2, window_bounds = array<i64: 3, 128, 256>}, {pipeline_mode = #tpu.pipeline_mode<synchronous>, transform_indices = @transform_3, window_bounds = array<i64: 1, 256>}, {pipeline_mode = #tpu.pipeline_mode<synchronous>, transform_indices = @transform_4, window_bounds = array<i64: 128, 128>}, {pipeline_mode = #tpu.pipeline_mode<synchronous>, transform_indices = @transform_5, window_bounds = array<i64: 1, 128>}, {transform_indices = @transform_6, window_bounds = array<i64: 1, 8, 128>}]} {
    %c0 = arith.constant 0 : index
    %c0_0 = arith.constant 0 : index
    %c0_1 = arith.constant 0 : index
    %0 = vector.load %arg2[%c0, %c0_0, %c0_1] : memref<1x8x128xbf16, #tpu.memory_space<vmem>>, vector<1x8x128xbf16>
    %1 = vector.shape_cast %0 : vector<1x8x128xbf16> to vector<8x128xbf16>
    %c0_2 = arith.constant 0 : index
    %c0_3 = arith.constant 0 : index
    %c0_4 = arith.constant 0 : index
    %2 = vector.load %arg4[%c0_2, %c0_3, %c0_4] : memref<3x128x256xbf16, #tpu.memory_space<vmem>>, vector<1x128x256xbf16>
    %3 = vector.shape_cast %2 : vector<1x128x256xbf16> to vector<128x256xbf16>
    %cst = arith.constant dense<0.000000e+00> : vector<8x256xf32>
    %4 = tpu.matmul %1, %3, %cst {dimension_numbers = #tpu.dot_dimension_numbers<[1], [0], [0], [1], [0, 0, 1, 1], [], []>} : vector<8x128xbf16>, vector<128x256xbf16>, vector<8x256xf32> -> vector<8x256xf32>
    %5 = arith.extf %1 : vector<8x128xbf16> to vector<8x128xf32>
    %c0_5 = arith.constant 0 : index
    %c0_6 = arith.constant 0 : index
    %c0_7 = arith.constant 0 : index
    %6 = vector.load %arg3[%c0_5, %c0_6, %c0_7] : memref<1x8x128xbf16, #tpu.memory_space<vmem>>, vector<1x8x128xbf16>
    %7 = vector.shape_cast %6 : vector<1x8x128xbf16> to vector<8x128xbf16>
    %8 = arith.extf %7 : vector<8x128xbf16> to vector<8x128xf32>
    %9 = vector.extract_strided_slice %8 {offsets = [7, 0], sizes = [1, 128], strides = [1, 1]} : vector<8x128xf32> to vector<1x128xf32>
    %10 = vector.extract_strided_slice %5 {offsets = [0, 0], sizes = [7, 128], strides = [1, 1]} : vector<8x128xf32> to vector<7x128xf32>
    %11 = tpu.concatenate %9, %10 in 0 : vector<1x128xf32>, vector<7x128xf32> -> vector<8x128xf32>
    %12 = arith.truncf %11 : vector<8x128xf32> to vector<8x128xbf16>
    %c1 = arith.constant 1 : index
    %c0_8 = arith.constant 0 : index
    %c0_9 = arith.constant 0 : index
    %13 = vector.load %arg4[%c1, %c0_8, %c0_9] : memref<3x128x256xbf16, #tpu.memory_space<vmem>>, vector<1x128x256xbf16>
    %14 = vector.shape_cast %13 : vector<1x128x256xbf16> to vector<128x256xbf16>
    %cst_10 = arith.constant dense<0.000000e+00> : vector<8x256xf32>
    %15 = tpu.matmul %12, %14, %cst_10 {dimension_numbers = #tpu.dot_dimension_numbers<[1], [0], [0], [1], [0, 0, 1, 1], [], []>} : vector<8x128xbf16>, vector<128x256xbf16>, vector<8x256xf32> -> vector<8x256xf32>
    %16 = arith.addf %4, %15 : vector<8x256xf32>
    %17 = vector.extract_strided_slice %8 {offsets = [6, 0], sizes = [2, 128], strides = [1, 1]} : vector<8x128xf32> to vector<2x128xf32>
    %18 = vector.extract_strided_slice %5 {offsets = [0, 0], sizes = [6, 128], strides = [1, 1]} : vector<8x128xf32> to vector<6x128xf32>
    %19 = tpu.concatenate %17, %18 in 0 : vector<2x128xf32>, vector<6x128xf32> -> vector<8x128xf32>
    %20 = arith.truncf %19 : vector<8x128xf32> to vector<8x128xbf16>
    %c2 = arith.constant 2 : index
    %c0_11 = arith.constant 0 : index
    %c0_12 = arith.constant 0 : index
    %21 = vector.load %arg4[%c2, %c0_11, %c0_12] : memref<3x128x256xbf16, #tpu.memory_space<vmem>>, vector<1x128x256xbf16>
    %22 = vector.shape_cast %21 : vector<1x128x256xbf16> to vector<128x256xbf16>
    %cst_13 = arith.constant dense<0.000000e+00> : vector<8x256xf32>
    %23 = tpu.matmul %20, %22, %cst_13 {dimension_numbers = #tpu.dot_dimension_numbers<[1], [0], [0], [1], [0, 0, 1, 1], [], []>} : vector<8x128xbf16>, vector<128x256xbf16>, vector<8x256xf32> -> vector<8x256xf32>
    %24 = arith.addf %16, %23 : vector<8x256xf32>
    %c0_14 = arith.constant 0 : index
    %c0_15 = arith.constant 0 : index
    %25 = vector.load %arg5[%c0_14, %c0_15] : memref<1x256xf32, #tpu.memory_space<vmem>>, vector<1x256xf32>
    %26 = vector.broadcast %25 : vector<1x256xf32> to vector<8x256xf32>
    %27 = arith.addf %24, %26 : vector<8x256xf32>
    %28 = vector.extract_strided_slice %27 {offsets = [0, 0], sizes = [8, 128], strides = [1, 1]} : vector<8x256xf32> to vector<8x128xf32>
    %29 = vector.extract_strided_slice %27 {offsets = [0, 128], sizes = [8, 128], strides = [1, 1]} : vector<8x256xf32> to vector<8x128xf32>
    %30 = arith.negf %29 : vector<8x128xf32>
    %31 = math.exp %30 : vector<8x128xf32>
    %cst_16 = arith.constant 1.000000e+00 : f32
    %32 = vector.broadcast %cst_16 : f32 to vector<8x128xf32>
    %33 = arith.addf %32, %31 : vector<8x128xf32>
    %34 = arith.divf %32, %33 : vector<8x128xf32>
    %35 = arith.mulf %28, %34 : vector<8x128xf32>
    %36 = arith.truncf %35 : vector<8x128xf32> to vector<8x128xbf16>
    %c0_17 = arith.constant 0 : index
    %c0_18 = arith.constant 0 : index
    %37 = vector.load %arg6[%c0_17, %c0_18] : memref<128x128xbf16, #tpu.memory_space<vmem>>, vector<128x128xbf16>
    %cst_19 = arith.constant dense<0.000000e+00> : vector<8x128xf32>
    %38 = tpu.matmul %36, %37, %cst_19 {dimension_numbers = #tpu.dot_dimension_numbers<[1], [0], [0], [1], [0, 0, 1, 1], [], []>} : vector<8x128xbf16>, vector<128x128xbf16>, vector<8x128xf32> -> vector<8x128xf32>
    %c0_20 = arith.constant 0 : index
    %c0_21 = arith.constant 0 : index
    %39 = vector.load %arg7[%c0_20, %c0_21] : memref<1x128xf32, #tpu.memory_space<vmem>>, vector<1x128xf32>
    %40 = vector.broadcast %39 : vector<1x128xf32> to vector<8x128xf32>
    %41 = arith.addf %38, %40 : vector<8x128xf32>
    %cst_22 = arith.constant dense<0xFF800000> : vector<8xf32>
    %42 = vector.multi_reduction <maximumf>, %41, %cst_22 [1] : vector<8x128xf32> to vector<8xf32>
    %43 = vector.shape_cast %42 : vector<8xf32> to vector<8x1xf32>
    %44 = vector.broadcast %43 : vector<8x1xf32> to vector<8x128xf32>
    %45 = arith.subf %41, %44 : vector<8x128xf32>
    %46 = math.exp %45 : vector<8x128xf32>
    %cst_23 = arith.constant dense<0.000000e+00> : vector<8xf32>
    %47 = vector.multi_reduction <add>, %46, %cst_23 [1] : vector<8x128xf32> to vector<8xf32>
    %48 = vector.shape_cast %47 : vector<8xf32> to vector<8x1xf32>
    %49 = tpu.reciprocal %48 {approx = true} : vector<8x1xf32> -> vector<8x1xf32>
    %50 = vector.broadcast %49 : vector<8x1xf32> to vector<8x128xf32>
    %51 = arith.mulf %46, %50 : vector<8x128xf32>
    %52 = arith.truncf %51 : vector<8x128xf32> to vector<8x128xbf16>
    %c0_24 = arith.constant 0 : index
    %c0_25 = arith.constant 0 : index
    %c0_26 = arith.constant 0 : index
    %53 = vector.load %arg8[%c0_24, %c0_25, %c0_26] : memref<1x8x128xbf16, #tpu.memory_space<vmem>>, vector<1x8x128xbf16>
    %54 = vector.shape_cast %53 : vector<1x8x128xbf16> to vector<8x128xbf16>
    %55 = vector.shape_cast %52 : vector<8x128xbf16> to vector<1x8x128xbf16>
    tpu.vector_store %arg8[%c0_24, %c0_25, %c0_26], %55 {strides = array<i32>} : memref<1x8x128xbf16, #tpu.memory_space<vmem>>, vector<1x8x128xbf16>,
    return
  }
  func.func @transform_0(%arg0: i32, %arg1: i32) -> (i32, i32, i32) {
    %c0_i32 = arith.constant 0 : i32
    %c0_i32_0 = arith.constant 0 : i32
    return %arg0, %arg1, %c0_i32 : i32, i32, i32
  }
  func.func @transform_1(%arg0: i32, %arg1: i32) -> (i32, i32, i32) {
    %c0_i32 = arith.constant 0 : i32
    %c0_i32_0 = arith.constant 0 : i32
    return %arg0, %arg1, %c0_i32 : i32, i32, i32
  }
  func.func @transform_2(%arg0: i32, %arg1: i32) -> (i32, i32, i32) {
    %c0_i32 = arith.constant 0 : i32
    %c0_i32_0 = arith.constant 0 : i32
    %c0_i32_1 = arith.constant 0 : i32
    %c0_i32_2 = arith.constant 0 : i32
    return %c0_i32, %c0_i32_0, %c0_i32_1 : i32, i32, i32
  }
  func.func @transform_3(%arg0: i32, %arg1: i32) -> (i32, i32) {
    %c0_i32 = arith.constant 0 : i32
    %c0_i32_0 = arith.constant 0 : i32
    %c0_i32_1 = arith.constant 0 : i32
    return %c0_i32, %c0_i32_0 : i32, i32
  }
  func.func @transform_4(%arg0: i32, %arg1: i32) -> (i32, i32) {
    %c0_i32 = arith.constant 0 : i32
    %c0_i32_0 = arith.constant 0 : i32
    %c0_i32_1 = arith.constant 0 : i32
    return %c0_i32, %c0_i32_0 : i32, i32
  }
  func.func @transform_5(%arg0: i32, %arg1: i32) -> (i32, i32) {
    %c0_i32 = arith.constant 0 : i32
    %c0_i32_0 = arith.constant 0 : i32
    %c0_i32_1 = arith.constant 0 : i32
    return %c0_i32, %c0_i32_0 : i32, i32
  }
  func.func @transform_6(%arg0: i32, %arg1: i32) -> (i32, i32, i32) {
    %c0_i32 = arith.constant 0 : i32
    %c0_i32_0 = arith.constant 0 : i32
    return %arg0, %arg1, %c0_i32 : i32, i32, i32
  }
}

</mosaic_0001>

<bundles_post_ra>
// kernel: tpu_custom_call.1
= control target key start
LH: loop header
LB: loop body
LE: loop exit
PB: predicated region body
PF: predicated region fallthrough
CT: control target
= control target key end

     0   :  { %s1922_s0 = inlined_call_operand.hbm [shape: bf16[2,8,128], index: 0, kind: input, shape index: {}]   ;;  %s1923_s1 = inlined_call_operand.hbm [shape: bf16[2,8,128], index: 1, kind: input, shape index: {}]   ;;  %s1924_s2 = inlined_call_operand.hbm [shape: bf16[3,128,256], index: 2, kind: input, shape index: {}]   ;;  %s1925_s3 = inlined_call_operand.vmem [shape: f32[1,256], index: 3, kind: input, shape index: {}]   ;;  %s1926_s4 = inlined_call_operand.hbm [shape: bf16[128,128], index: 4, kind: input, shape index: {}]   ;;  %s1927_s5 = inlined_call_operand.vmem [shape: f32[1,128], index: 5, kind: input, shape index: {}]   ;;  %s1928_s6 = inlined_call_operand.hbm [shape: bf16[2,8,128], index: 6, kind: output, shape index: {}]  }
   0x1   :  { %1935 = sst [smem:[#allocation19_spill]] %s1924_s2 }
   0x2   :  { %1936 = sst [smem:[#allocation20_spill]] %s1926_s4 }
   0x3   :  { %11 = vsyncpa [#allocation3], 0 }
   0x4   :  { %13 = vsyncpa [#allocation3 + $0x1], 0 }
   0x5   :  { %14 = vsyncpa [#allocation6], 0 }
   0x6   :  { %16 = vsyncpa [#allocation6 + $0x1], 0 }
   0x7   :  { %17 = vsyncpa [#allocation9], 0 }
   0x8   :  { %18 = vsyncpa [#allocation4], 0 }
   0x9   :  { %20 = vsyncpa [#allocation4 + $0x1], 0  ;;  %s1620_s21 = smov 0   ;;  %s1622_s22 = smov 0  }
   0xa   :  { %s1624_s23 = smov 0   ;;  %s1626_s24 = smov 0  }
   0xb   :  { %s1628_s25 = smov 0   ;;  %s1630_s26 = smov 0  }
   0xc LB: > { %1937 = sst [smem:[#allocation16_spill]] %s1567_s25  ;;  %s1651_s27 = sadd.s32 4294967295, %s1571_s26   ;;  %s1571_s26 = sphi %s1630_s26, %s26_s26   ;;  %s1567_s25 = sphi %s1628_s25, %s1960_s25   ;;  %s1563_s24 = sphi %s1626_s24, %s1959_s24   ;;  %s1559_s23 = sphi %s1624_s23, %s1963_s23   ;;  %s1555_s22 = sphi %s1622_s22, %s1962_s22   ;;  %s1551_s21 = sphi %s1620_s21, %s1961_s21  }
   0xd   : > { %s1072_s28 = sadd.s32 4294967294, %s1571_s26   ;;  %p60_p0 = scmp.ne.s32.totalorder %s1555_s22, %s1551_s21 }
   0xe   : > { %p1929_p1 = scmp.eq.s32.totalorder %s1651_s27, 0  ;;  %p204_p3 = scmp.eq.s32.totalorder %s1072_s28, 1 }
   0xf   : > { %p1073_p5 = scmp.ge.s32.totalorder %s1571_s26, 1  ;;  %p211_p7 = scmp.lt.s32.totalorder %s1571_s26, 3 }
  0x10   : > { %p1660_p4 = por %p1929_p1, %p60_p0  ;;  %p1665_p6 = por %p204_p3, %p60_p0 }
  0x11   : > { %p1670_p8 = pnand %p1073_p5, %p211_p7  ;;  %s1573_s8 = smov [#allocation7]  }
  0x12   : > { %s1938_s29 = scalar_select %p1660_p4, 1, 0 }
  0x13   : > { %s1939_s30 = scalar_select %p1665_p6, 1, 0 }
  0x14   : > { %s1940_s7 = scalar_select %p1670_p8, 1, 0 }
  0x15   : > { %s223_s9 = sshll.u32 %s1573_s8, 4  ;;  %p1192_p9 = pneg %p1670_p8  ;;  %s1674_s9 = int_to_ptr.vmem [resolvable:$true] %s223_s9 }
  0x16   : > { %s1574_s11 = smov [#allocation8]   ;;  %s1942_s2 = sld [smem:[#allocation19_spill]] }
  0x17   : > { %p1681_p11 = pnand %p1192_p9, %p1929_p1  ;;  %s239_s12 = sshll.u32 %s1574_s11, 4  ;;  %s1685_s12 = int_to_ptr.vmem [resolvable:$true] %s239_s12 }
  0x19   : > { %p1363_p13 = pneg %p1681_p11 }
  0x1c   : > { %s1361_s15 = scalar_lea.hbm %s1942_s2, 6144 }
  0x1d   : > { %p1362_p12 = scmp.ne.s32.totalorder %s1942_s2, %s1361_s15  ;;  %p1368_p5 = scmp.lt.u32.totalorder %s1361_s15, %s1942_s2 }
  0x1f   : > { %p1364_p0 = pnand %p1363_p13, %p1362_p12 }
  0x21   : > { %p1365_p3 = pneg %p1364_p0 }
  0x23   : > { %p1370_p7 = pnand %p1368_p5, %p1365_p3 }
  0x25   : > { %1373 = shalt.err (!%p1370_p7)
}
  0x26   : > { %s1374_s20 = scalar_lea.vmem %s1674_s9, 6144  ;;  %p1382_p2 = scmp.lt.s32.totalorder %s1674_s9, %s1674_s9 }
  0x27   : > { %p1375_p9 = scmp.ne.s32.totalorder %s1674_s9, %s1374_s20  ;;  %p1383_p12 = scmp.lt.s32.totalorder %s1374_s20, %s1374_s20 }
  0x29   : > { %p1377_p10 = pnand %p1375_p9, %p1363_p13  ;;  %p1384_p0 = por %p1383_p12, %p1382_p2 }
  0x2b   : > { %p1378_p1 = pneg %p1377_p10 }
  0x2d   : > { %p1385_p6 = pnand %p1384_p0, %p1378_p1 }
  0x2f   : > { %1388 = shalt.err (!%p1385_p6)
}
  0x30   : > { %s1575_s28 = smov 128   ;;  %s1576_s8 = smov 8  }
  0x31   : > { %1195 = dma.hbm_to_vmem [thread:$0]  (!%p1681_p11), %s1942_s2, 6144, %s1674_s9, [#allocation6], %s1575_s28, %s1575_s28, %s1576_s8  }
  0x32   : > { %s1943_s4 = sld [smem:[#allocation20_spill]] }
  0x38   : > { %s1389_s16 = scalar_lea.hbm %s1943_s4, 1024 }
  0x39   : > { %p1390_p2 = scmp.ne.s32.totalorder %s1943_s4, %s1389_s16  ;;  %p1396_p10 = scmp.lt.u32.totalorder %s1389_s16, %s1943_s4 }
  0x3b   : > { %p1392_p1 = pnand %p1390_p2, %p1363_p13 }
  0x3d   : > { %p1393_p6 = pneg %p1392_p1 }
  0x3f   : > { %p1398_p3 = pnand %p1396_p10, %p1393_p6 }
  0x41   : > { %1401 = shalt.err (!%p1398_p3)
}
  0x42   : > { %s1402_s9 = scalar_lea.vmem %s1685_s12, 1024  ;;  %p1410_p12 = scmp.lt.s32.totalorder %s1685_s12, %s1685_s12 }
  0x43   : > { %p1403_p5 = scmp.ne.s32.totalorder %s1685_s12, %s1402_s9  ;;  %p1411_p0 = scmp.lt.s32.totalorder %s1402_s9, %s1402_s9 }
  0x45   : > { %p1405_p7 = pnand %p1403_p5, %p1363_p13  ;;  %p1412_p2 = por %p1411_p0, %p1410_p12 }
  0x47   : > { %p1406_p9 = pneg %p1405_p7 }
  0x49   : > { %p1413_p1 = pnand %p1412_p2, %p1406_p9 }
  0x4b   : > { %1416 = shalt.err (!%p1413_p1)
}
  0x4c   : > { %s1577_s28 = smov 64   ;;  %s1578_s8 = smov 4  }
  0x4d   : > { %1198 = dma.hbm_to_vmem [thread:$0]  (!%p1681_p11), %s1943_s4, 1024, %s1685_s12, [#allocation9], %s1577_s28, %s1577_s28, %s1578_s8  }
  0x4e   : > { %s38_s14 = sadd.s32 1, %s1567_s25  ;;  %s47_s15 = sadd.s32 1, %s1559_s23 }
  0x4f   : > { %p40_p13 = scmp.ge.s32.totalorder %s38_s14, 2  ;;  %p54_p6 = scmp.ne.s32.totalorder %s1559_s23, %s1555_s22 }
  0x50   : > { %p55_p10 = scmp.eq.s32.totalorder %s1571_s26, 0  ;;  %p1212_p3 = scmp.lt.s32.totalorder %s1571_s26, 2 }
  0x51   : > { %s1965_s14 = smov (%p40_p13, %s38_s14), 0  ;;  %p1945_p7 = scmp.eq.s32.totalorder %s1651_s27, 1 }
  0x52   : > { %1944 = sst [smem:[#allocation17_spill]] %s1965_s14  ;;  %p56_p5 = por %p55_p10, %p54_p6 }
  0x53   : > { %p1749_p9 = por %p1945_p7, %p54_p6  ;;  %s42_s10 = ssub.s32 %s1567_s25, %s1965_s14 }
  0x54   : > { %s256_s17 = sand.u32 1, %s1559_s23   ;;  %p45_p12 = scmp.eq.s32.totalorder %s42_s10, 0 }
  0x55   : > { %s1946_s16 = scalar_select %p1749_p9, 1, 0 }
  0x56   : > { %s1756_s12 = sshll.u32 %s256_s17, 2  ;;  %s1078_s18 = sshll.u32 %s1567_s25, 6 }
  0x57   : > { %s1760_s19 = scalar_select %p45_p12, %s1559_s23, %s47_s15  }
  0x58   : > { %s1765_s28 = scalar_lea.hbm %s1922_s0, %s1078_s18  ;;  %s260_s8 = scalar_lea.vmem [#allocation2], %s1756_s12 }
  0x59   : > { %1947 = sst [smem:[#allocation18_spill]] %s1760_s19  ;;  %s268_s11 = sshll.u32 %s260_s8, 4  ;;  %s1774_s11 = int_to_ptr.vmem [resolvable:$true] %s268_s11 }
  0x5a   : > { %p1770_p11 = pnand %p1212_p3, %p56_p5  ;;  %s1779_s20 = scalar_lea.hbm %s1923_s1, %s1078_s18 }
  0x5b   : > { %s257_s9 = scalar_lea.sflag [#allocation3], %s256_s17  ;;  %s1417_s2 = scalar_lea.hbm %s1765_s28, 64 }
  0x5c   : > { %p1418_p0 = scmp.ne.s32.totalorder %s1765_s28, %s1417_s2  ;;  %p1419_p2 = pneg %p1770_p11 }
  0x5d   : > { %s1422_s14 = scalar_lea.hbm %s1922_s0, 128  ;;  %p1423_p6 = scmp.lt.u32.totalorder %s1765_s28, %s1922_s0 }
  0x5e   : > { %p1420_p1 = pnand %p1419_p2, %p1418_p0  ;;  %p1424_p10 = scmp.lt.u32.totalorder %s1422_s14, %s1417_s2 }
  0x5f   : > { %p1426_p5 = scmp.lt.u32.totalorder %s1417_s2, %s1765_s28 }
  0x60   : > { %p1421_p13 = pneg %p1420_p1  ;;  %p1425_p3 = por %p1424_p10, %p1423_p6 }
  0x62   : > { %p1427_p7 = por %p1426_p5, %p1425_p3 }
  0x64   : > { %p1428_p12 = pnand %p1427_p7, %p1421_p13 }
  0x66   : > { %1431 = shalt.err (!%p1428_p12)
}
  0x67   : > { %s1432_s17 = scalar_lea.vmem %s1774_s11, 64  ;;  %s1579_s4 = smov [#allocation2]  }
  0x68   : > { %p1433_p0 = scmp.ne.s32.totalorder %s1774_s11, %s1432_s17  ;;  %s1437_s18 = sshll.u32 %s1579_s4, 4  ;;  %s1438_s18 = int_to_ptr.vmem [resolvable:$false] %s1437_s18 }
  0x69   : > { %s1439_s25 = scalar_lea.vmem %s1438_s18, 128  ;;  %p1440_p4 = scmp.lt.s32.totalorder %s1774_s11, %s1438_s18 }
  0x6a   : > { %p1435_p1 = pnand %p1433_p0, %p1419_p2  ;;  %p1441_p6 = scmp.lt.s32.totalorder %s1439_s25, %s1432_s17 }
  0x6c   : > { %p1436_p9 = pneg %p1435_p1  ;;  %p1442_p10 = por %p1441_p6, %p1440_p4 }
  0x6e   : > { %p1443_p3 = pnand %p1442_p10, %p1436_p9 }
  0x70   : > { %1446 = shalt.err (!%p1443_p3)
}
  0x71   : > { %1202 = dma.hbm_to_vmem [thread:$0]  (!%p1770_p11), %s1765_s28, 64, %s1774_s11, %s257_s9  }
  0x72   : > { %s275_s2 = sand.u32 1, %s1571_s26   ;;  %s279_s14 = scalar_lea.vmem [#allocation5], %s1756_s12 }
  0x73   : > { %s287_s19 = sshll.u32 %s279_s14, 4  ;;  %s276_s15 = scalar_lea.sflag [#allocation6], %s275_s2  ;;  %s288_s19 = int_to_ptr.vmem [resolvable:$true] %s287_s19 }
  0x74   : > { %s1447_s10 = scalar_lea.hbm %s1779_s20, 64  ;;  %s1452_s4 = scalar_lea.hbm %s1923_s1, 128 }
  0x75   : > { %p1448_p4 = scmp.ne.s32.totalorder %s1779_s20, %s1447_s10  ;;  %p1453_p5 = scmp.lt.u32.totalorder %s1779_s20, %s1923_s1 }
  0x76   : > { %p1454_p7 = scmp.lt.u32.totalorder %s1452_s4, %s1447_s10  ;;  %p1456_p0 = scmp.lt.u32.totalorder %s1447_s10, %s1779_s20 }
  0x77   : > { %p1450_p9 = pnand %p1448_p4, %p1419_p2 }
  0x78   : > { %p1455_p12 = por %p1454_p7, %p1453_p5 }
  0x79   : > { %p1451_p13 = pneg %p1450_p9 }
  0x7a   : > { %p1457_p1 = por %p1456_p0, %p1455_p12 }
  0x7c   : > { %p1458_p6 = pnand %p1457_p1, %p1451_p13 }
  0x7e   : > { %1461 = shalt.err (!%p1458_p6)
}
  0x7f   : > { %s1462_s12 = scalar_lea.vmem %s288_s19, 64  ;;  %s1580_s28 = smov [#allocation5]  }
  0x80   : > { %p1463_p10 = scmp.ne.s32.totalorder %s288_s19, %s1462_s12  ;;  %s1467_s11 = sshll.u32 %s1580_s28, 4  ;;  %s1468_s11 = int_to_ptr.vmem [resolvable:$false] %s1467_s11 }
  0x81   : > { %s1469_s9 = scalar_lea.vmem %s1468_s11, 128  ;;  %p1470_p9 = scmp.lt.s32.totalorder %s288_s19, %s1468_s11 }
  0x82   : > { %p1465_p3 = pnand %p1463_p10, %p1419_p2  ;;  %p1471_p8 = scmp.lt.s32.totalorder %s1469_s9, %s1462_s12 }
  0x84   : > { %p1466_p4 = pneg %p1465_p3  ;;  %p1472_p5 = por %p1471_p8, %p1470_p9 }
  0x86   : > { %p1473_p7 = pnand %p1472_p5, %p1466_p4 }
  0x88   : > { %1476 = shalt.err (!%p1473_p7)
}
  0x89   : > { %1205 = dma.hbm_to_vmem [thread:$0]  (!%p1770_p11), %s1779_s20, 64, %s288_s19, %s276_s15  }
  0x8a   : > { %p1949_p13 = scmp.ne.s32.totalorder %s1940_s7, 0 }
  0x8b   : > { %s1830_s2 = sand.u32 (!%p1949_p13), 1, %s1555_s22   ;;  %p1950_p8 = scmp.ne.s32.totalorder (!%p1949_p13), %s1938_s29, 0 }
  0x8c   : > { %296 = sbr.rel (%p1949_p13) target bundleno = 1013 (0x3f5), region = 44  ;;  %s1833_s14 = sshll.u32 (!%p1949_p13), %s1830_s2, 2 }
  0x8d   : > { %s299_s10 = scalar_lea.sflag (!%p1949_p13), [#allocation3], %s1830_s2  ;;  %s302_s8 = scalar_lea.vmem (!%p1949_p13), [#allocation2], %s1833_s14 }
  0x93   : > { %1530 = dma.done.wait (%p1950_p8), %s299_s10, 64  }
  0x94   : > { %1532 = vsyncadd (%p1950_p8), %s299_s10, 4294967232  ;;  %s307_s7 = sand.u32 1, %s1651_s27   ;;  %s311_s20 = scalar_lea.vmem [#allocation5], %s1833_s14 }
  0x95   : > { %s308_s13 = scalar_lea.sflag [#allocation6], %s307_s7 }
  0x96   : > { %1534 = dma.done.wait (%p1950_p8), %s308_s13, 64  }
  0x97   : > { %1536 = vsyncadd (%p1950_p8), %s308_s13, 4294967232  ;;  %p1951_p11 = scmp.eq.s32.totalorder %s1651_s27, 0 }
  0x99   : > { %1538 = dma.done.wait (%p1951_p11), [#allocation6], 6144   ;;  %p1952_p2 = pmov %p1951_p11 }
  0x9b   : > { %1540 = vsyncadd (%p1952_p2), [#allocation6], 4294961152  ;;  %p1953_p12 = pmov %p1952_p2 }
  0x9c   : > { %p1954_p0 = pmov %p1952_p2 }
  0x9d   : > { %1542 = dma.done.wait (%p1953_p12), [#allocation9], 1024  }
  0x9e   : > { %1544 = vsyncadd (%p1954_p0), [#allocation9], 4294966272  ;;  %v1581_v0 = vmov 0   ;;  %v1273_v1 = vld [vmem:[#allocation7 + $0x84] ss:$8 sps:$4 sm:$0xff]   ;;  %vm380_vm0 = vcmask 1040384  }
  0x9f   : > { %512 = vmatprep.mubr.bf16.mxu0 %v1581_v0  ;;  %633 = vmatprep.mubr.bf16.mxu1 %v1581_v0  ;;  %v1275_v2 = vld [vmem:[#allocation7 + $0x4] ss:$8 sps:$4 sm:$0xff]   ;;  %v1277_v3 = vld [vmem:[#allocation7 + $0x80] ss:$8 sps:$4 sm:$0xff]   ;;  %v1279_v5 = vld [vmem:[#allocation7 + $0x94] ss:$8 sps:$4 sm:$0xff]  }
  0xa0   : > { %480 = vmatprep.subr.bf16.mxu0 %v1273_v1  ;;  %v1278_v4 = vld [vmem:[#allocation7] ss:$8 sps:$4 sm:$0xff]   ;;  %601 = vmatprep.subr.bf16.mxu1 %v1275_v2  ;;  %v1281_v6 = vld [vmem:[#allocation7 + $0x14] ss:$8 sps:$4 sm:$0xff]   ;;  %v1283_v7 = vld [vmem:[#allocation7 + $0x90] ss:$8 sps:$4 sm:$0xff]  }
  0xa1   : > { %481 = vmatpush1.bf16.msra.mxu0 %v1277_v3  ;;  %602 = vmatpush1.bf16.msra.mxu1 %v1278_v4  ;;  %v1284_v8 = vld [vmem:[#allocation7 + $0x10] ss:$8 sps:$4 sm:$0xff]   ;;  %v1285_v9 = vld [vmem:[#allocation7 + $0xa4] ss:$8 sps:$4 sm:$0xff]   ;;  %v1289_v11 = vld [vmem:[#allocation7 + $0xa0] ss:$8 sps:$4 sm:$0xff]  }
  0xa2   : > { %482 = vmatprep.subr.bf16.mxu0 %v1279_v5  ;;  %603 = vmatprep.subr.bf16.mxu1 %v1281_v6  ;;  %v1287_v10 = vld [vmem:[#allocation7 + $0x24] ss:$8 sps:$4 sm:$0xff]   ;;  %v1290_v12 = vld [vmem:[#allocation7 + $0x20] ss:$8 sps:$4 sm:$0xff]   ;;  %v1291_v13 = vld [vmem:[#allocation7 + $0xb4] ss:$8 sps:$4 sm:$0xff]  }
  0xa3   : > { %v1293_v14 = vld [vmem:[#allocation7 + $0x34] ss:$8 sps:$4 sm:$0xff]   ;;  %v1295_v15 = vld [vmem:[#allocation7 + $0xb0] ss:$8 sps:$4 sm:$0xff]   ;;  %v1297_v17 = vld [vmem:[#allocation7 + $0xc4] ss:$8 sps:$4 sm:$0xff]  }
  0xa4   : > { %v1296_v16 = vld [vmem:[#allocation7 + $0x30] ss:$8 sps:$4 sm:$0xff]   ;;  %v1299_v18 = vld [vmem:[#allocation7 + $0x44] ss:$8 sps:$4 sm:$0xff]   ;;  %v1301_v19 = vld [vmem:[#allocation7 + $0xc0] ss:$8 sps:$4 sm:$0xff]  }
  0xa5   : > { %483 = vmatpush1.bf16.msra.mxu0 %v1283_v7  ;;  %604 = vmatpush1.bf16.msra.mxu1 %v1284_v8  ;;  %v1302_v20 = vld [vmem:[#allocation7 + $0x40] ss:$8 sps:$4 sm:$0xff]   ;;  %v1303_v21 = vld [vmem:[#allocation7 + $0xd4] ss:$8 sps:$4 sm:$0xff]   ;;  %v1307_v23 = vld [vmem:[#allocation7 + $0xd0] ss:$8 sps:$4 sm:$0xff]  }
  0xa6   : > { %484 = vmatprep.subr.bf16.mxu0 %v1285_v9  ;;  %605 = vmatprep.subr.bf16.mxu1 %v1287_v10  ;;  %v1305_v22 = vld [vmem:[#allocation7 + $0x54] ss:$8 sps:$4 sm:$0xff]   ;;  %v1308_v24 = vld [vmem:[#allocation7 + $0x50] ss:$8 sps:$4 sm:$0xff]   ;;  %v1309_v25 = vld [vmem:[#allocation7 + $0xe4] ss:$8 sps:$4 sm:$0xff]  }
  0xa7   : > { %v1311_v26 = vld [vmem:[#allocation7 + $0x64] ss:$8 sps:$4 sm:$0xff]   ;;  %v354_v27 = vld [vmem:[%s302_s8] sm:$0xf]  ;;  %v372_v28 = vld [vmem:[%s311_s20] sm:$0xf] }
  0xa8   : > { %v371_v29 = vunpack.c.l.bf16 %v354_v27  ;;  %v373_v30 = vunpack.c.l.bf16 %v372_v28  ;;  %v1313_v31 = vld [vmem:[#allocation7 + $0xe0] ss:$8 sps:$4 sm:$0xff]   ;;  %v1315_v33 = vld [vmem:[#allocation7 + $0xf4] ss:$8 sps:$4 sm:$0xff]   ;;  %v1319_v37 = vld [vmem:[#allocation7 + $0xf0] ss:$8 sps:$4 sm:$0xff]  }
  0xa9   : > { %485 = vmatpush1.bf16.msra.mxu0 %v1289_v11  ;;  %606 = vmatpush1.bf16.msra.mxu1 %v1290_v12  ;;  %v1314_v32 = vld [vmem:[#allocation7 + $0x60] ss:$8 sps:$4 sm:$0xff]   ;;  %v1317_v36 = vld [vmem:[#allocation7 + $0x74] ss:$8 sps:$4 sm:$0xff]   ;;  %v1320_v38 = vld [vmem:[#allocation7 + $0x70] ss:$8 sps:$4 sm:$0xff]  }
  0xaa   : > { %486 = vmatprep.subr.bf16.mxu0 %v1291_v13  ;;  %607 = vmatprep.subr.bf16.mxu1 %v1293_v14  ;;  %v375_v34 = vrot.slane %v373_v30, 7  ;;  %v378_v35 = vrot.slane %v371_v29, 7  ;;  %v1323_v40 = vld [vmem:[#allocation7 + $0x104] ss:$8 sps:$4 sm:$0xff]   ;;  %v1321_v42 = vld [vmem:[#allocation7 + $0x100] ss:$8 sps:$4 sm:$0xff]  }
  0xab   : > { %v1326_v43 = vld [vmem:[#allocation7 + $0x114] ss:$8 sps:$4 sm:$0xff]   ;;  %v1324_v44 = vld [vmem:[#allocation7 + $0x110] ss:$8 sps:$4 sm:$0xff]   ;;  %v1329_v45 = vld [vmem:[#allocation7 + $0x124] ss:$8 sps:$4 sm:$0xff]  }
  0xac   : > { %v381_v39 = vsel %vm380_vm0, %v375_v34, %v378_v35  ;;  %v1327_v46 = vld [vmem:[#allocation7 + $0x120] ss:$8 sps:$4 sm:$0xff]   ;;  %v1332_v47 = vld [vmem:[#allocation7 + $0x134] ss:$8 sps:$4 sm:$0xff]   ;;  %v1330_v48 = vld [vmem:[#allocation7 + $0x130] ss:$8 sps:$4 sm:$0xff]  }
  0xad   : > { %487 = vmatpush1.bf16.msra.mxu0 %v1295_v15  ;;  %608 = vmatpush1.bf16.msra.mxu1 %v1296_v16  ;;  %v382_v41 = vpack.c.bf16 %v381_v39, %v381_v39  ;;  %v1335_v49 = vld [vmem:[#allocation7 + $0x144] ss:$8 sps:$4 sm:$0xff]   ;;  %v1333_v50 = vld [vmem:[#allocation7 + $0x140] ss:$8 sps:$4 sm:$0xff]   ;;  %v1338_v51 = vld [vmem:[#allocation7 + $0x154] ss:$8 sps:$4 sm:$0xff]   ;;  %v791_v16 = vlaneseq }
  0xae   : > { %488 = vmatprep.subr.bf16.mxu0 %v1297_v17  ;;  %609 = vmatprep.subr.bf16.mxu1 %v1299_v18  ;;  %v1336_v52 = vld [vmem:[#allocation7 + $0x150] ss:$8 sps:$4 sm:$0xff]   ;;  %v1341_v53 = vld [vmem:[#allocation7 + $0x164] ss:$8 sps:$4 sm:$0xff]   ;;  %v1339_v54 = vld [vmem:[#allocation7 + $0x160] ss:$8 sps:$4 sm:$0xff]  }
  0xaf   : > { %v642_v55 = vrot.slane %v373_v30, 6  ;;  %v644_v56 = vrot.slane %v371_v29, 6  ;;  %v1344_v57 = vld [vmem:[#allocation7 + $0x174] ss:$8 sps:$4 sm:$0xff]   ;;  %vm646_vm1 = vcmask 1041408   ;;  %v1345_v61 = vld [vmem:[#allocation8] sm:$0xff]  }
  0xb0   : > { %v1342_v58 = vld [vmem:[#allocation7 + $0x170] ss:$8 sps:$4 sm:$0xff]   ;;  %v1582_v62 = vmov 0.0   ;;  %v1346_v63 = vld [vmem:[#allocation8 + $0x8] sm:$0xff]   ;;  %v1349_v2 = vld [vmem:[#allocation8 + $0x20] sm:$0xff]   ;;  %vm1583_vm2 = vmmov 0  }
  0xb1   : > { %489 = vmatpush1.bf16.msra.mxu0 %v1301_v19  ;;  %610 = vmatpush1.bf16.msra.mxu1 %v1302_v20  ;;  %v647_v59 = vsel %vm646_vm1, %v642_v55, %v644_v56  ;;  %v1348_v1 = vld [vmem:[#allocation8 + $0x18] sm:$0xff]   ;;  %v1350_v3 = vld [vmem:[#allocation8 + $0x28] sm:$0xff]   ;;  %v1351_v4 = vld [vmem:[#allocation8 + $0x30] sm:$0xff]   ;;  %v792_v17 = vshrl.u32 %v791_v16, 7  ;;  %s1146_s17 = sshll.u32 %s1563_s24, 6  ;;  %s352_s4 = scalar_lea.vmem [#allocation10], %s1833_s14 }
  0xb2   : > { %490 = vmatprep.subr.bf16.mxu0 %v1303_v21  ;;  %611 = vmatprep.subr.bf16.mxu1 %v1305_v22  ;;  %v648_v60 = vpack.c.bf16 %v647_v59, %v647_v59  ;;  %v1352_v5 = vld [vmem:[#allocation8 + $0x38] sm:$0xff]   ;;  %v789_v19 = vld [vmem:[%s1925_s3] sm:$0x3]  ;;  %s948_s18 = sshll.u32 %s352_s4, 4  ;;  %s1873_s28 = scalar_lea.hbm %s1928_s6, %s1146_s17  ;;  %s1875_s18 = int_to_ptr.vmem [resolvable:$true] %s948_s18 }
  0xb3   : > { %v797_v18 = vsub.s32 1, %v792_v17  ;;  %s934_s11 = scalar_lea.sflag [#allocation4], %s1830_s2  ;;  %s1477_s9 = scalar_lea.vmem %s1875_s18, 64 }
  0xb4   : > { %p1478_p1 = scmp.ne.s32.totalorder %s1875_s18, %s1477_s9  ;;  %p1955_p6 = scmp.ne.s32.totalorder %s1946_s16, 0 }
  0xb5   : > { %491 = vmatpush1.bf16.msra.mxu0 %v1307_v23  ;;  %612 = vmatpush1.bf16.msra.mxu1 %v1308_v24  ;;  %v798_v21 = vrot.slane %v789_v19, %v797_v18  ;;  %s1584_s24 = smov [#allocation10]  }
  0xb6   : > { %492 = vmatprep.subr.bf16.mxu0 %v1309_v25  ;;  %613 = vmatprep.subr.bf16.mxu1 %v1311_v26  ;;  %p1479_p10 = pnand %p1478_p1, %p1955_p6  ;;  %s1481_s14 = sshll.u32 %s1584_s24, 4  ;;  %s1482_s14 = int_to_ptr.vmem [resolvable:$false] %s1481_s14 }
  0xb7   : > { %s1483_s10 = scalar_lea.vmem %s1482_s14, 128  ;;  %p1484_p4 = scmp.lt.s32.totalorder %s1875_s18, %s1482_s14 }
  0xb8   : > { %p1480_p3 = pneg %p1479_p10  ;;  %p1485_p9 = scmp.lt.s32.totalorder %s1483_s10, %s1477_s9 }
  0xb9   : > { %493 = vmatpush1.bf16.msra.mxu0 %v1313_v31  ;;  %614 = vmatpush1.bf16.msra.mxu1 %v1314_v32  ;;  %v793_v31 = vsub.s32 0, %v792_v17 }
  0xba   : > { %494 = vmatprep.subr.bf16.mxu0 %v1315_v33  ;;  %615 = vmatprep.subr.bf16.mxu1 %v1317_v36  ;;  %p1486_p5 = por %p1485_p9, %p1484_p4 }
  0xbb   : > { %v794_v32 = vrot.slane %v789_v19, %v793_v31 }
  0xbc   : > { %p1487_p7 = pnand %p1486_p5, %p1480_p3 }
  0xbd   : > { %495 = vmatpush1.bf16.msra.mxu0 %v1319_v37  ;;  %616 = vmatpush1.bf16.msra.mxu1 %v1320_v38  ;;  %v1136_v37 = vld [vmem:[%s1927_s5] ss:$0 sm:$0xff] }
  0xbe   : > { %746 = vmatprep.subr.bf16.mxu0 %v1323_v40  ;;  %1158 = vmatprep.subr.bf16.mxu1 %v1582_v62 }
  0xc0   : > { %513 = vmatmul.mubr.bf16.vlgmr.msra.gmra.mrb[0].mxu0 %v382_v41  ;;  %634 = vmatmul.mubr.bf16.vlgmr.msra.gmra.mrb[0].mxu1 %v354_v27 }
  0xc1   : > { %747 = vmatpush1.bf16.msra.mxu0 %v1321_v42  ;;  %778 = vmatprep.mubr.bf16.mxu0 %v1581_v0  ;;  %v1347_v0 = vld [vmem:[#allocation8 + $0x10] sm:$0xff]  }
  0xc2   : > { %748 = vmatprep.subr.bf16.mxu0 %v1326_v43  ;;  %1159 = vmatpush3.bf16.msra.mxu1 %v1345_v61 }
  0xc3   : > { %1160 = vmatprep.subr.bf16.mxu1 %v1582_v62  ;;  %1174 = vmatprep.mubr.msk.bf16.mxu1 %vm1583_vm2, %v1582_v62 }
  0xc5   : > { %749 = vmatpush1.bf16.msra.mxu0 %v1324_v44 }
  0xc6   : > { %750 = vmatprep.subr.bf16.mxu0 %v1329_v45  ;;  %1161 = vmatpush3.bf16.msra.mxu1 %v1346_v63 }
  0xc7   : > { %1162 = vmatprep.subr.bf16.mxu1 %v1582_v62 }
  0xc9   : > { %751 = vmatpush1.bf16.msra.mxu0 %v1327_v46 }
  0xca   : > { %752 = vmatprep.subr.bf16.mxu0 %v1332_v47  ;;  %1163 = vmatpush3.bf16.msra.mxu1 %v1347_v0 }
  0xcb   : > { %1164 = vmatprep.subr.bf16.mxu1 %v1582_v62 }
  0xcd   : > { %753 = vmatpush1.bf16.msra.mxu0 %v1330_v48 }
  0xce   : > { %754 = vmatprep.subr.bf16.mxu0 %v1335_v49  ;;  %1165 = vmatpush3.bf16.msra.mxu1 %v1348_v1 }
  0xcf   : > { %1166 = vmatprep.subr.bf16.mxu1 %v1582_v62 }
  0xd1   : > { %755 = vmatpush1.bf16.msra.mxu0 %v1333_v50 }
  0xd2   : > { %756 = vmatprep.subr.bf16.mxu0 %v1338_v51  ;;  %1167 = vmatpush3.bf16.msra.mxu1 %v1349_v2 }
  0xd3   : > { %1168 = vmatprep.subr.bf16.mxu1 %v1582_v62 }
  0xd5   : > { %757 = vmatpush1.bf16.msra.mxu0 %v1336_v52 }
  0xd6   : > { %758 = vmatprep.subr.bf16.mxu0 %v1341_v53  ;;  %1169 = vmatpush3.bf16.msra.mxu1 %v1350_v3 }
  0xd7   : > { %1170 = vmatprep.subr.bf16.mxu1 %v1582_v62 }
  0xd9   : > { %759 = vmatpush1.bf16.msra.mxu0 %v1339_v54 }
  0xda   : > { %760 = vmatprep.subr.bf16.mxu0 %v1344_v57  ;;  %1171 = vmatpush3.bf16.msra.mxu1 %v1351_v4 }
  0xdb   : > { %1172 = vmatprep.subr.bf16.mxu1 %v1582_v62 }
  0xdd   : > { %761 = vmatpush1.bf16.msra.mxu0 %v1342_v58 }
  0xde   : > { %1173 = vmatpush3.bf16.msra.mxu1 %v1352_v5 }
  0xe0   : > { %779 = vmatmul.mubr.bf16.vlgmr.msra.gmra.mrb[4].mxu0 %v648_v60 }
 0x193   : > { %v514_v6 = vpop.f32.mrb[0].mxu0  ;;  %v635_v7 = vpop.f32.mrb[0].mxu1 }
 0x194   : > { %v636_v8 = vadd.f32 %v635_v7, %v514_v6  ;;  %v516_v9 = vpop.f32.mrb[1].mxu0  ;;  %v637_v10 = vpop.f32.mrb[1].mxu1 }
 0x195   : > { %v638_v11 = vadd.f32 %v637_v10, %v516_v9  ;;  %v518_v12 = vpop.f32.mrb[2].mxu0  ;;  %v639_v13 = vpop.f32.mrb[2].mxu1 }
 0x196   : > { %v519_v14 = vpop.f32.mrb[3].mxu0  ;;  %v640_v15 = vpop.f32.mrb[3].mxu1 }
 0x1b3   : > { %v780_v20 = vpop.f32.mrb[4].mxu0 }
 0x1b4   : > { %v787_v22 = vadd.f32 %v780_v20, %v636_v8  ;;  %v782_v23 = vpop.f32.mrb[5].mxu0 }
 0x1b5   : > { %v788_v24 = vadd.f32 %v782_v23, %v638_v11  ;;  %v784_v25 = vpop.f32.mrb[6].mxu0 }
 0x1b6   : > { %v785_v26 = vpop.f32.mrb[7].mxu0  ;;  %v801_v33 = vadd.f32 %v794_v32, %v787_v22 }
 0x1b7   : > { %v802_v27 = vadd.f32 %v798_v21, %v788_v24 }
 0x1b9   : > { %v1135_v28 = vmul.f32 -1.442695, %v802_v27 }
 0x1bb   : > { %1353 = vpow2.f32 %v1135_v28 }
 0x1c5   : > { %v1354_v29 = vpop.eup %1353 }
 0x1c6   : > { %v806_v30 = vadd.f32 1.0, %v1354_v29 }
 0x1c8   : > { %1355 = vrcp.f32 %v806_v30 }
 0x1d2   : > { %v1356_v34 = vpop.eup %1355 }
 0x1d3   : > { %v809_v35 = vmul.f32 %v1356_v34, %v801_v33 }
 0x1d5   : > { %v810_v36 = vpack.c.bf16 %v809_v35, %v809_v35 }
 0x1d7   : > { %1175 = vmatmul.mubr.bf16.vlgmr.msra.gmra.mrb[4].mxu1 %v810_v36 }
 0x2aa   : > { %v916_v38 = vpop.f32.mrb[4].mxu1 }
 0x2ab   : > { %v917_v39 = vadd.f32 %v1136_v37, %v916_v38  ;;  %v1176_v40 = vpop.f32.mrb[5].mxu1 }
 0x2ac   : > { %v919_v41 = vpop.f32.mrb[6].mxu1 }
 0x2ad   : > { %922 = vmax.xlane.f32.xlu0 %v917_v39  ;;  %v1177_v42 = vpop.f32.mrb[7].mxu1 }
 0x33a   : > { %v923_v43 = vpop.xlane.xlu0 %922 }
 0x33b   : > { %v924_v44 = vsub.f32 %v917_v39, %v923_v43 }
 0x33d   : > { %v925_v45 = vmul.f32 1.442695, %v924_v44 }
 0x33f   : > { %1357 = vpow2.f32 %v925_v45 }
 0x349   : > { %v1358_v46 = vpop.eup %1357 }
 0x34a   : > { %927 = vadd.xlane.f32.xlu0 %v1358_v46 }
 0x3d7   : > { %v928_v47 = vpop.xlane.xlu0 %927 }
 0x3d8   : > { %1359 = vrcp.f32 %v928_v47 }
 0x3e2   : > { %v1360_v48 = vpop.eup %1359 }
 0x3e3   : > { %v930_v49 = vmul.f32 %v1360_v48, %v1358_v46 }
 0x3e5   : > { %v931_v50 = vpack.c.bf16 %v930_v49, %v930_v49 }
 0x3e7   : > { %932 = vst [vmem:[%s352_s4] sm:$0xf] %v931_v50 }
 0x3e8   : > { %1490 = shalt.err (!%p1487_p7)
}
 0x3e9   : > { %s1491_s2 = scalar_lea.hbm %s1873_s28, 64  ;;  %s1495_s13 = scalar_lea.hbm %s1928_s6, 128 }
 0x3ea   : > { %p1492_p13 = scmp.ne.s32.totalorder %s1873_s28, %s1491_s2  ;;  %p1496_p2 = scmp.lt.u32.totalorder %s1873_s28, %s1928_s6 }
 0x3eb   : > { %p1497_p12 = scmp.lt.u32.totalorder %s1495_s13, %s1491_s2  ;;  %p1499_p1 = scmp.lt.u32.totalorder %s1491_s2, %s1873_s28 }
 0x3ec   : > { %p1493_p8 = pnand %p1492_p13, %p1955_p6 }
 0x3ed   : > { %p1498_p0 = por %p1497_p12, %p1496_p2 }
 0x3ee   : > { %p1494_p11 = pneg %p1493_p8 }
 0x3ef   : > { %p1500_p10 = por %p1499_p1, %p1498_p0 }
 0x3f1   : > { %p1501_p3 = pnand %p1500_p10, %p1494_p11 }
 0x3f3   : > { %1504 = shalt.err (!%p1501_p3)
}
 0x3f4   : > { %1190 = dma.vmem_to_hbm [thread:$0]  (%p1955_p6), %s1875_s18, 64, %s1873_s28, %s934_s11  }
 0x3f5 PF: > { %s960_s29 = sand.u32 1, %s1551_s21   ;;  %p1956_p4 = scmp.ne.s32.totalorder %s1939_s30, 0 }
 0x3f6   : > { %p1957_p9 = scmp.ge.s32.totalorder %s1571_s26, 2  ;;  %s961_s19 = scalar_lea.sflag [#allocation4], %s960_s29 }
 0x3f8   : > { %p1207_p5 = pnand %p1957_p9, %p1956_p4 }
 0x3fa   : > { %1546 = dma.done.wait (!%p1207_p5), %s961_s19, 64  }
 0x3fb   : > { %1548 = vsyncadd (!%p1207_p5), %s961_s19, 4294967232  ;;  %s26_s26 = sadd.s32 1, %s1571_s26   ;;  %s1958_s16 = sld [smem:[#allocation18_spill]] }
 0x3fc   : > { %p23_p7 = scmp.ge.s32.totalorder %s26_s26, 4   ;;  %s1959_s24 = sld [smem:[#allocation16_spill]] }
 0x3fd   : > { %s1960_s25 = sld [smem:[#allocation17_spill]]  ;;  %s1961_s21 = smov %s1555_s22 }
 0x3fe   : > { %s1962_s22 = smov %s1559_s23  ;;  %25 = sbr.rel (!%p23_p7) target bundleno = 12 (0xc), region = 112 }
 0x401   : > { %s1963_s23 = smov %s1958_s16 }
 0x405   :  { %966 = vsyncpa [#allocation3], 1 }
 0x406   :  { %968 = vsyncpa [#allocation3 + $0x1], 1 }
 0x407   :  { %969 = vsyncpa [#allocation6], 1 }
 0x408   :  { %971 = vsyncpa [#allocation6 + $0x1], 1 }
 0x409   :  { %972 = vsyncpa [#allocation9], 1 }
 0x40a   :  { %973 = vsyncpa [#allocation4], 1 }
 0x40b   :  { %975 = vsyncpa [#allocation4 + $0x1], 1 }

// kernel: tpu_custom_call.1
= control target key start
LH: loop header
LB: loop body
LE: loop exit
PB: predicated region body
PF: predicated region fallthrough
CT: control target
= control target key end

     0   :  { %s1922_s0 = inlined_call_operand.hbm [shape: bf16[2,8,128], index: 0, kind: input, shape index: {}]   ;;  %s1923_s1 = inlined_call_operand.hbm [shape: bf16[2,8,128], index: 1, kind: input, shape index: {}]   ;;  %s1924_s2 = inlined_call_operand.hbm [shape: bf16[3,128,256], index: 2, kind: input, shape index: {}]   ;;  %s1925_s3 = inlined_call_operand.vmem [shape: f32[1,256], index: 3, kind: input, shape index: {}]   ;;  %s1926_s4 = inlined_call_operand.hbm [shape: bf16[128,128], index: 4, kind: input, shape index: {}]   ;;  %s1927_s5 = inlined_call_operand.vmem [shape: f32[1,128], index: 5, kind: input, shape index: {}]   ;;  %s1928_s6 = inlined_call_operand.hbm [shape: bf16[2,8,128], index: 6, kind: output, shape index: {}]  }
   0x1   :  { %1935 = sst [smem:[#allocation19_spill]] %s1924_s2 }
   0x2   :  { %1936 = sst [smem:[#allocation20_spill]] %s1926_s4 }
   0x3   :  { %11 = vsyncpa [#allocation3], 0 }
   0x4   :  { %13 = vsyncpa [#allocation3 + $0x1], 0 }
   0x5   :  { %14 = vsyncpa [#allocation6], 0 }
   0x6   :  { %16 = vsyncpa [#allocation6 + $0x1], 0 }
   0x7   :  { %17 = vsyncpa [#allocation9], 0 }
   0x8   :  { %18 = vsyncpa [#allocation4], 0 }
   0x9   :  { %20 = vsyncpa [#allocation4 + $0x1], 0  ;;  %s1620_s21 = smov 0   ;;  %s1622_s22 = smov 0  }
   0xa   :  { %s1624_s23 = smov 0   ;;  %s1626_s24 = smov 0  }
   0xb   :  { %s1628_s25 = smov 0   ;;  %s1630_s26 = smov 0  }
   0xc LB: > { %1937 = sst [smem:[#allocation16_spill]] %s1567_s25  ;;  %s1651_s27 = sadd.s32 4294967295, %s1571_s26   ;;  %s1571_s26 = sphi %s1630_s26, %s26_s26   ;;  %s1567_s25 = sphi %s1628_s25, %s1960_s25   ;;  %s1563_s24 = sphi %s1626_s24, %s1959_s24   ;;  %s1559_s23 = sphi %s1624_s23, %s1963_s23   ;;  %s1555_s22 = sphi %s1622_s22, %s1962_s22   ;;  %s1551_s21 = sphi %s1620_s21, %s1961_s21  }
   0xd   : > { %s1072_s28 = sadd.s32 4294967294, %s1571_s26   ;;  %p60_p0 = scmp.ne.s32.totalorder %s1555_s22, %s1551_s21 }
   0xe   : > { %p1929_p1 = scmp.eq.s32.totalorder %s1651_s27, 0  ;;  %p204_p3 = scmp.eq.s32.totalorder %s1072_s28, 1 }
   0xf   : > { %p1073_p5 = scmp.ge.s32.totalorder %s1571_s26, 1  ;;  %p211_p7 = scmp.lt.s32.totalorder %s1571_s26, 3 }
  0x10   : > { %p1660_p4 = por %p1929_p1, %p60_p0  ;;  %p1665_p6 = por %p204_p3, %p60_p0 }
  0x11   : > { %p1670_p8 = pnand %p1073_p5, %p211_p7  ;;  %s1573_s8 = smov [#allocation7]  }
  0x12   : > { %s1938_s29 = scalar_select %p1660_p4, 1, 0 }
  0x13   : > { %s1939_s30 = scalar_select %p1665_p6, 1, 0 }
  0x14   : > { %s1940_s7 = scalar_select %p1670_p8, 1, 0 }
  0x15   : > { %s223_s9 = sshll.u32 %s1573_s8, 4  ;;  %p1192_p9 = pneg %p1670_p8  ;;  %s1674_s9 = int_to_ptr.vmem [resolvable:$true] %s223_s9 }
  0x16   : > { %s1574_s11 = smov [#allocation8]   ;;  %s1942_s2 = sld [smem:[#allocation19_spill]] }
  0x17   : > { %p1681_p11 = pnand %p1192_p9, %p1929_p1  ;;  %s239_s12 = sshll.u32 %s1574_s11, 4  ;;  %s1685_s12 = int_to_ptr.vmem [resolvable:$true] %s239_s12 }
  0x19   : > { %p1363_p13 = pneg %p1681_p11 }
  0x1c   : > { %s1361_s15 = scalar_lea.hbm %s1942_s2, 6144 }
  0x1d   : > { %p1362_p12 = scmp.ne.s32.totalorder %s1942_s2, %s1361_s15  ;;  %p1368_p5 = scmp.lt.u32.totalorder %s1361_s15, %s1942_s2 }
  0x1f   : > { %p1364_p0 = pnand %p1363_p13, %p1362_p12 }
  0x21   : > { %p1365_p3 = pneg %p1364_p0 }
  0x23   : > { %p1370_p7 = pnand %p1368_p5, %p1365_p3 }
  0x25   : > { %1373 = shalt.err (!%p1370_p7)
}
  0x26   : > { %s1374_s20 = scalar_lea.vmem %s1674_s9, 6144  ;;  %p1382_p2 = scmp.lt.s32.totalorder %s1674_s9, %s1674_s9 }
  0x27   : > { %p1375_p9 = scmp.ne.s32.totalorder %s1674_s9, %s1374_s20  ;;  %p1383_p12 = scmp.lt.s32.totalorder %s1374_s20, %s1374_s20 }
  0x29   : > { %p1377_p10 = pnand %p1375_p9, %p1363_p13  ;;  %p1384_p0 = por %p1383_p12, %p1382_p2 }
  0x2b   : > { %p1378_p1 = pneg %p1377_p10 }
  0x2d   : > { %p1385_p6 = pnand %p1384_p0, %p1378_p1 }
  0x2f   : > { %1388 = shalt.err (!%p1385_p6)
}
  0x30   : > { %s1575_s28 = smov 128   ;;  %s1576_s8 = smov 8  }
  0x31   : > { %1195 = dma.hbm_to_vmem [thread:$0]  (!%p1681_p11), %s1942_s2, 6144, %s1674_s9, [#allocation6], %s1575_s28, %s1575_s28, %s1576_s8  }
  0x32   : > { %s1943_s4 = sld [smem:[#allocation20_spill]] }
  0x38   : > { %s1389_s16 = scalar_lea.hbm %s1943_s4, 1024 }
  0x39   : > { %p1390_p2 = scmp.ne.s32.totalorder %s1943_s4, %s1389_s16  ;;  %p1396_p10 = scmp.lt.u32.totalorder %s1389_s16, %s1943_s4 }
  0x3b   : > { %p1392_p1 = pnand %p1390_p2, %p1363_p13 }
  0x3d   : > { %p1393_p6 = pneg %p1392_p1 }
  0x3f   : > { %p1398_p3 = pnand %p1396_p10, %p1393_p6 }
  0x41   : > { %1401 = shalt.err (!%p1398_p3)
}
  0x42   : > { %s1402_s9 = scalar_lea.vmem %s1685_s12, 1024  ;;  %p1410_p12 = scmp.lt.s32.totalorder %s1685_s12, %s1685_s12 }
  0x43   : > { %p1403_p5 = scmp.ne.s32.totalorder %s1685_s12, %s1402_s9  ;;  %p1411_p0 = scmp.lt.s32.totalorder %s1402_s9, %s1402_s9 }
  0x45   : > { %p1405_p7 = pnand %p1403_p5, %p1363_p13  ;;  %p1412_p2 = por %p1411_p0, %p1410_p12 }
  0x47   : > { %p1406_p9 = pneg %p1405_p7 }
  0x49   : > { %p1413_p1 = pnand %p1412_p2, %p1406_p9 }
  0x4b   : > { %1416 = shalt.err (!%p1413_p1)
}
  0x4c   : > { %s1577_s28 = smov 64   ;;  %s1578_s8 = smov 4  }
  0x4d   : > { %1198 = dma.hbm_to_vmem [thread:$0]  (!%p1681_p11), %s1943_s4, 1024, %s1685_s12, [#allocation9], %s1577_s28, %s1577_s28, %s1578_s8  }
  0x4e   : > { %s38_s14 = sadd.s32 1, %s1567_s25  ;;  %s47_s15 = sadd.s32 1, %s1559_s23 }
  0x4f   : > { %p40_p13 = scmp.ge.s32.totalorder %s38_s14, 2  ;;  %p54_p6 = scmp.ne.s32.totalorder %s1559_s23, %s1555_s22 }
  0x50   : > { %p55_p10 = scmp.eq.s32.totalorder %s1571_s26, 0  ;;  %p1212_p3 = scmp.lt.s32.totalorder %s1571_s26, 2 }
  0x51   : > { %s1965_s14 = smov (%p40_p13, %s38_s14), 0  ;;  %p1945_p7 = scmp.eq.s32.totalorder %s1651_s27, 1 }
  0x52   : > { %1944 = sst [smem:[#allocation17_spill]] %s1965_s14  ;;  %p56_p5 = por %p55_p10, %p54_p6 }
  0x53   : > { %p1749_p9 = por %p1945_p7, %p54_p6  ;;  %s42_s10 = ssub.s32 %s1567_s25, %s1965_s14 }
  0x54   : > { %s256_s17 = sand.u32 1, %s1559_s23   ;;  %p45_p12 = scmp.eq.s32.totalorder %s42_s10, 0 }
  0x55   : > { %s1946_s16 = scalar_select %p1749_p9, 1, 0 }
  0x56   : > { %s1756_s12 = sshll.u32 %s256_s17, 2  ;;  %s1078_s18 = sshll.u32 %s1567_s25, 6 }
  0x57   : > { %s1760_s19 = scalar_select %p45_p12, %s1559_s23, %s47_s15  }
  0x58   : > { %s1765_s28 = scalar_lea.hbm %s1922_s0, %s1078_s18  ;;  %s260_s8 = scalar_lea.vmem [#allocation2], %s1756_s12 }
  0x59   : > { %1947 = sst [smem:[#allocation18_spill]] %s1760_s19  ;;  %s268_s11 = sshll.u32 %s260_s8, 4  ;;  %s1774_s11 = int_to_ptr.vmem [resolvable:$true] %s268_s11 }
  0x5a   : > { %p1770_p11 = pnand %p1212_p3, %p56_p5  ;;  %s1779_s20 = scalar_lea.hbm %s1923_s1, %s1078_s18 }
  0x5b   : > { %s257_s9 = scalar_lea.sflag [#allocation3], %s256_s17  ;;  %s1417_s2 = scalar_lea.hbm %s1765_s28, 64 }
  0x5c   : > { %p1418_p0 = scmp.ne.s32.totalorder %s1765_s28, %s1417_s2  ;;  %p1419_p2 = pneg %p1770_p11 }
  0x5d   : > { %s1422_s14 = scalar_lea.hbm %s1922_s0, 128  ;;  %p1423_p6 = scmp.lt.u32.totalorder %s1765_s28, %s1922_s0 }
  0x5e   : > { %p1420_p1 = pnand %p1419_p2, %p1418_p0  ;;  %p1424_p10 = scmp.lt.u32.totalorder %s1422_s14, %s1417_s2 }
  0x5f   : > { %p1426_p5 = scmp.lt.u32.totalorder %s1417_s2, %s1765_s28 }
  0x60   : > { %p1421_p13 = pneg %p1420_p1  ;;  %p1425_p3 = por %p1424_p10, %p1423_p6 }
  0x62   : > { %p1427_p7 = por %p1426_p5, %p1425_p3 }
  0x64   : > { %p1428_p12 = pnand %p1427_p7, %p1421_p13 }
  0x66   : > { %1431 = shalt.err (!%p1428_p12)
}
  0x67   : > { %s1432_s17 = scalar_lea.vmem %s1774_s11, 64  ;;  %s1579_s4 = smov [#allocation2]  }
  0x68   : > { %p1433_p0 = scmp.ne.s32.totalorder %s1774_s11, %s1432_s17  ;;  %s1437_s18 = sshll.u32 %s1579_s4, 4  ;;  %s1438_s18 = int_to_ptr.vmem [resolvable:$false] %s1437_s18 }
  0x69   : > { %s1439_s25 = scalar_lea.vmem %s1438_s18, 128  ;;  %p1440_p4 = scmp.lt.s32.totalorder %s1774_s11, %s1438_s18 }
  0x6a   : > { %p1435_p1 = pnand %p1433_p0, %p1419_p2  ;;  %p1441_p6 = scmp.lt.s32.totalorder %s1439_s25, %s1432_s17 }
  0x6c   : > { %p1436_p9 = pneg %p1435_p1  ;;  %p1442_p10 = por %p1441_p6, %p1440_p4 }
  0x6e   : > { %p1443_p3 = pnand %p1442_p10, %p1436_p9 }
  0x70   : > { %1446 = shalt.err (!%p1443_p3)
}
  0x71   : > { %1202 = dma.hbm_to_vmem [thread:$0]  (!%p1770_p11), %s1765_s28, 64, %s1774_s11, %s257_s9  }
  0x72   : > { %s275_s2 = sand.u32 1, %s1571_s26   ;;  %s279_s14 = scalar_lea.vmem [#allocation5], %s1756_s12 }
  0x73   : > { %s287_s19 = sshll.u32 %s279_s14, 4  ;;  %s276_s15 = scalar_lea.sflag [#allocation6], %s275_s2  ;;  %s288_s19 = int_to_ptr.vmem [resolvable:$true] %s287_s19 }
  0x74   : > { %s1447_s10 = scalar_lea.hbm %s1779_s20, 64  ;;  %s1452_s4 = scalar_lea.hbm %s1923_s1, 128 }
  0x75   : > { %p1448_p4 = scmp.ne.s32.totalorder %s1779_s20, %s1447_s10  ;;  %p1453_p5 = scmp.lt.u32.totalorder %s1779_s20, %s1923_s1 }
  0x76   : > { %p1454_p7 = scmp.lt.u32.totalorder %s1452_s4, %s1447_s10  ;;  %p1456_p0 = scmp.lt.u32.totalorder %s1447_s10, %s1779_s20 }
  0x77   : > { %p1450_p9 = pnand %p1448_p4, %p1419_p2 }
  0x78   : > { %p1455_p12 = por %p1454_p7, %p1453_p5 }
  0x79   : > { %p1451_p13 = pneg %p1450_p9 }
  0x7a   : > { %p1457_p1 = por %p1456_p0, %p1455_p12 }
  0x7c   : > { %p1458_p6 = pnand %p1457_p1, %p1451_p13 }
  0x7e   : > { %1461 = shalt.err (!%p1458_p6)
}
  0x7f   : > { %s1462_s12 = scalar_lea.vmem %s288_s19, 64  ;;  %s1580_s28 = smov [#allocation5]  }
  0x80   : > { %p1463_p10 = scmp.ne.s32.totalorder %s288_s19, %s1462_s12  ;;  %s1467_s11 = sshll.u32 %s1580_s28, 4  ;;  %s1468_s11 = int_to_ptr.vmem [resolvable:$false] %s1467_s11 }
  0x81   : > { %s1469_s9 = scalar_lea.vmem %s1468_s11, 128  ;;  %p1470_p9 = scmp.lt.s32.totalorder %s288_s19, %s1468_s11 }
  0x82   : > { %p1465_p3 = pnand %p1463_p10, %p1419_p2  ;;  %p1471_p8 = scmp.lt.s32.totalorder %s1469_s9, %s1462_s12 }
  0x84   : > { %p1466_p4 = pneg %p1465_p3  ;;  %p1472_p5 = por %p1471_p8, %p1470_p9 }
  0x86   : > { %p1473_p7 = pnand %p1472_p5, %p1466_p4 }
  0x88   : > { %1476 = shalt.err (!%p1473_p7)
}
  0x89   : > { %1205 = dma.hbm_to_vmem [thread:$0]  (!%p1770_p11), %s1779_s20, 64, %s288_s19, %s276_s15  }
  0x8a   : > { %p1949_p13 = scmp.ne.s32.totalorder %s1940_s7, 0 }
  0x8b   : > { %s1830_s2 = sand.u32 (!%p1949_p13), 1, %s1555_s22   ;;  %p1950_p8 = scmp.ne.s32.totalorder (!%p1949_p13), %s1938_s29, 0 }
  0x8c   : > { %296 = sbr.rel (%p1949_p13) target bundleno = 1013 (0x3f5), region = 44  ;;  %s1833_s14 = sshll.u32 (!%p1949_p13), %s1830_s2, 2 }
  0x8d   : > { %s299_s10 = scalar_lea.sflag (!%p1949_p13), [#allocation3], %s1830_s2  ;;  %s302_s8 = scalar_lea.vmem (!%p1949_p13), [#allocation2], %s1833_s14 }
  0x93   : > { %1530 = dma.done.wait (%p1950_p8), %s299_s10, 64  }
  0x94   : > { %1532 = vsyncadd (%p1950_p8), %s299_s10, 4294967232  ;;  %s307_s7 = sand.u32 1, %s1651_s27   ;;  %s311_s20 = scalar_lea.vmem [#allocation5], %s1833_s14 }
  0x95   : > { %s308_s13 = scalar_lea.sflag [#allocation6], %s307_s7 }
  0x96   : > { %1534 = dma.done.wait (%p1950_p8), %s308_s13, 64  }
  0x97   : > { %1536 = vsyncadd (%p1950_p8), %s308_s13, 4294967232  ;;  %p1951_p11 = scmp.eq.s32.totalorder %s1651_s27, 0 }
  0x99   : > { %1538 = dma.done.wait (%p1951_p11), [#allocation6], 6144   ;;  %p1952_p2 = pmov %p1951_p11 }
  0x9b   : > { %1540 = vsyncadd (%p1952_p2), [#allocation6], 4294961152  ;;  %p1953_p12 = pmov %p1952_p2 }
  0x9c   : > { %p1954_p0 = pmov %p1952_p2 }
  0x9d   : > { %1542 = dma.done.wait (%p1953_p12), [#allocation9], 1024  }
  0x9e   : > { %1544 = vsyncadd (%p1954_p0), [#allocation9], 4294966272  ;;  %v1581_v0 = vmov 0   ;;  %v1273_v1 = vld [vmem:[#allocation7 + $0x84] ss:$8 sps:$4 sm:$0xff]   ;;  %vm380_vm0 = vcmask 1040384  }
  0x9f   : > { %512 = vmatprep.mubr.bf16.mxu0 %v1581_v0  ;;  %633 = vmatprep.mubr.bf16.mxu1 %v1581_v0  ;;  %v1275_v2 = vld [vmem:[#allocation7 + $0x4] ss:$8 sps:$4 sm:$0xff]   ;;  %v1277_v3 = vld [vmem:[#allocation7 + $0x80] ss:$8 sps:$4 sm:$0xff]   ;;  %v1279_v5 = vld [vmem:[#allocation7 + $0x94] ss:$8 sps:$4 sm:$0xff]  }
  0xa0   : > { %480 = vmatprep.subr.bf16.mxu0 %v1273_v1  ;;  %v1278_v4 = vld [vmem:[#allocation7] ss:$8 sps:$4 sm:$0xff]   ;;  %601 = vmatprep.subr.bf16.mxu1 %v1275_v2  ;;  %v1281_v6 = vld [vmem:[#allocation7 + $0x14] ss:$8 sps:$4 sm:$0xff]   ;;  %v1283_v7 = vld [vmem:[#allocation7 + $0x90] ss:$8 sps:$4 sm:$0xff]  }
  0xa1   : > { %481 = vmatpush1.bf16.msra.mxu0 %v1277_v3  ;;  %602 = vmatpush1.bf16.msra.mxu1 %v1278_v4  ;;  %v1284_v8 = vld [vmem:[#allocation7 + $0x10] ss:$8 sps:$4 sm:$0xff]   ;;  %v1285_v9 = vld [vmem:[#allocation7 + $0xa4] ss:$8 sps:$4 sm:$0xff]   ;;  %v1289_v11 = vld [vmem:[#allocation7 + $0xa0] ss:$8 sps:$4 sm:$0xff]  }
  0xa2   : > { %482 = vmatprep.subr.bf16.mxu0 %v1279_v5  ;;  %603 = vmatprep.subr.bf16.mxu1 %v1281_v6  ;;  %v1287_v10 = vld [vmem:[#allocation7 + $0x24] ss:$8 sps:$4 sm:$0xff]   ;;  %v1290_v12 = vld [vmem:[#allocation7 + $0x20] ss:$8 sps:$4 sm:$0xff]   ;;  %v1291_v13 = vld [vmem:[#allocation7 + $0xb4] ss:$8 sps:$4 sm:$0xff]  }
  0xa3   : > { %v1293_v14 = vld [vmem:[#allocation7 + $0x34] ss:$8 sps:$4 sm:$0xff]   ;;  %v1295_v15 = vld [vmem:[#allocation7 + $0xb0] ss:$8 sps:$4 sm:$0xff]   ;;  %v1297_v17 = vld [vmem:[#allocation7 + $0xc4] ss:$8 sps:$4 sm:$0xff]  }
  0xa4   : > { %v1296_v16 = vld [vmem:[#allocation7 + $0x30] ss:$8 sps:$4 sm:$0xff]   ;;  %v1299_v18 = vld [vmem:[#allocation7 + $0x44] ss:$8 sps:$4 sm:$0xff]   ;;  %v1301_v19 = vld [vmem:[#allocation7 + $0xc0] ss:$8 sps:$4 sm:$0xff]  }
  0xa5   : > { %483 = vmatpush1.bf16.msra.mxu0 %v1283_v7  ;;  %604 = vmatpush1.bf16.msra.mxu1 %v1284_v8  ;;  %v1302_v20 = vld [vmem:[#allocation7 + $0x40] ss:$8 sps:$4 sm:$0xff]   ;;  %v1303_v21 = vld [vmem:[#allocation7 + $0xd4] ss:$8 sps:$4 sm:$0xff]   ;;  %v1307_v23 = vld [vmem:[#allocation7 + $0xd0] ss:$8 sps:$4 sm:$0xff]  }
  0xa6   : > { %484 = vmatprep.subr.bf16.mxu0 %v1285_v9  ;;  %605 = vmatprep.subr.bf16.mxu1 %v1287_v10  ;;  %v1305_v22 = vld [vmem:[#allocation7 + $0x54] ss:$8 sps:$4 sm:$0xff]   ;;  %v1308_v24 = vld [vmem:[#allocation7 + $0x50] ss:$8 sps:$4 sm:$0xff]   ;;  %v1309_v25 = vld [vmem:[#allocation7 + $0xe4] ss:$8 sps:$4 sm:$0xff]  }
  0xa7   : > { %v1311_v26 = vld [vmem:[#allocation7 + $0x64] ss:$8 sps:$4 sm:$0xff]   ;;  %v354_v27 = vld [vmem:[%s302_s8] sm:$0xf]  ;;  %v372_v28 = vld [vmem:[%s311_s20] sm:$0xf] }
  0xa8   : > { %v371_v29 = vunpack.c.l.bf16 %v354_v27  ;;  %v373_v30 = vunpack.c.l.bf16 %v372_v28  ;;  %v1313_v31 = vld [vmem:[#allocation7 + $0xe0] ss:$8 sps:$4 sm:$0xff]   ;;  %v1315_v33 = vld [vmem:[#allocation7 + $0xf4] ss:$8 sps:$4 sm:$0xff]   ;;  %v1319_v37 = vld [vmem:[#allocation7 + $0xf0] ss:$8 sps:$4 sm:$0xff]  }
  0xa9   : > { %485 = vmatpush1.bf16.msra.mxu0 %v1289_v11  ;;  %606 = vmatpush1.bf16.msra.mxu1 %v1290_v12  ;;  %v1314_v32 = vld [vmem:[#allocation7 + $0x60] ss:$8 sps:$4 sm:$0xff]   ;;  %v1317_v36 = vld [vmem:[#allocation7 + $0x74] ss:$8 sps:$4 sm:$0xff]   ;;  %v1320_v38 = vld [vmem:[#allocation7 + $0x70] ss:$8 sps:$4 sm:$0xff]  }
  0xaa   : > { %486 = vmatprep.subr.bf16.mxu0 %v1291_v13  ;;  %607 = vmatprep.subr.bf16.mxu1 %v1293_v14  ;;  %v375_v34 = vrot.slane %v373_v30, 7  ;;  %v378_v35 = vrot.slane %v371_v29, 7  ;;  %v1323_v40 = vld [vmem:[#allocation7 + $0x104] ss:$8 sps:$4 sm:$0xff]   ;;  %v1321_v42 = vld [vmem:[#allocation7 + $0x100] ss:$8 sps:$4 sm:$0xff]  }
  0xab   : > { %v1326_v43 = vld [vmem:[#allocation7 + $0x114] ss:$8 sps:$4 sm:$0xff]   ;;  %v1324_v44 = vld [vmem:[#allocation7 + $0x110] ss:$8 sps:$4 sm:$0xff]   ;;  %v1329_v45 = vld [vmem:[#allocation7 + $0x124] ss:$8 sps:$4 sm:$0xff]  }
  0xac   : > { %v381_v39 = vsel %vm380_vm0, %v375_v34, %v378_v35  ;;  %v1327_v46 = vld [vmem:[#allocation7 + $0x120] ss:$8 sps:$4 sm:$0xff]   ;;  %v1332_v47 = vld [vmem:[#allocation7 + $0x134] ss:$8 sps:$4 sm:$0xff]   ;;  %v1330_v48 = vld [vmem:[#allocation7 + $0x130] ss:$8 sps:$4 sm:$0xff]  }
  0xad   : > { %487 = vmatpush1.bf16.msra.mxu0 %v1295_v15  ;;  %608 = vmatpush1.bf16.msra.mxu1 %v1296_v16  ;;  %v382_v41 = vpack.c.bf16 %v381_v39, %v381_v39  ;;  %v1335_v49 = vld [vmem:[#allocation7 + $0x144] ss:$8 sps:$4 sm:$0xff]   ;;  %v1333_v50 = vld [vmem:[#allocation7 + $0x140] ss:$8 sps:$4 sm:$0xff]   ;;  %v1338_v51 = vld [vmem:[#allocation7 + $0x154] ss:$8 sps:$4 sm:$0xff]   ;;  %v791_v16 = vlaneseq }
  0xae   : > { %488 = vmatprep.subr.bf16.mxu0 %v1297_v17  ;;  %609 = vmatprep.subr.bf16.mxu1 %v1299_v18  ;;  %v1336_v52 = vld [vmem:[#allocation7 + $0x150] ss:$8 sps:$4 sm:$0xff]   ;;  %v1341_v53 = vld [vmem:[#allocation7 + $0x164] ss:$8 sps:$4 sm:$0xff]   ;;  %v1339_v54 = vld [vmem:[#allocation7 + $0x160] ss:$8 sps:$4 sm:$0xff]  }
  0xaf   : > { %v642_v55 = vrot.slane %v373_v30, 6  ;;  %v644_v56 = vrot.slane %v371_v29, 6  ;;  %v1344_v57 = vld [vmem:[#allocation7 + $0x174] ss:$8 sps:$4 sm:$0xff]   ;;  %vm646_vm1 = vcmask 1041408   ;;  %v1345_v61 = vld [vmem:[#allocation8] sm:$0xff]  }
  0xb0   : > { %v1342_v58 = vld [vmem:[#allocation7 + $0x170] ss:$8 sps:$4 sm:$0xff]   ;;  %v1582_v62 = vmov 0.0   ;;  %v1346_v63 = vld [vmem:[#allocation8 + $0x8] sm:$0xff]   ;;  %v1349_v2 = vld [vmem:[#allocation8 + $0x20] sm:$0xff]   ;;  %vm1583_vm2 = vmmov 0  }
  0xb1   : > { %489 = vmatpush1.bf16.msra.mxu0 %v1301_v19  ;;  %610 = vmatpush1.bf16.msra.mxu1 %v1302_v20  ;;  %v647_v59 = vsel %vm646_vm1, %v642_v55, %v644_v56  ;;  %v1348_v1 = vld [vmem:[#allocation8 + $0x18] sm:$0xff]   ;;  %v1350_v3 = vld [vmem:[#allocation8 + $0x28] sm:$0xff]   ;;  %v1351_v4 = vld [vmem:[#allocation8 + $0x30] sm:$0xff]   ;;  %v792_v17 = vshrl.u32 %v791_v16, 7  ;;  %s1146_s17 = sshll.u32 %s1563_s24, 6  ;;  %s352_s4 = scalar_lea.vmem [#allocation10], %s1833_s14 }
  0xb2   : > { %490 = vmatprep.subr.bf16.mxu0 %v1303_v21  ;;  %611 = vmatprep.subr.bf16.mxu1 %v1305_v22  ;;  %v648_v60 = vpack.c.bf16 %v647_v59, %v647_v59  ;;  %v1352_v5 = vld [vmem:[#allocation8 + $0x38] sm:$0xff]   ;;  %v789_v19 = vld [vmem:[%s1925_s3] sm:$0x3]  ;;  %s948_s18 = sshll.u32 %s352_s4, 4  ;;  %s1873_s28 = scalar_lea.hbm %s1928_s6, %s1146_s17  ;;  %s1875_s18 = int_to_ptr.vmem [resolvable:$true] %s948_s18 }
  0xb3   : > { %v797_v18 = vsub.s32 1, %v792_v17  ;;  %s934_s11 = scalar_lea.sflag [#allocation4], %s1830_s2  ;;  %s1477_s9 = scalar_lea.vmem %s1875_s18, 64 }
  0xb4   : > { %p1478_p1 = scmp.ne.s32.totalorder %s1875_s18, %s1477_s9  ;;  %p1955_p6 = scmp.ne.s32.totalorder %s1946_s16, 0 }
  0xb5   : > { %491 = vmatpush1.bf16.msra.mxu0 %v1307_v23  ;;  %612 = vmatpush1.bf16.msra.mxu1 %v1308_v24  ;;  %v798_v21 = vrot.slane %v789_v19, %v797_v18  ;;  %s1584_s24 = smov [#allocation10]  }
  0xb6   : > { %492 = vmatprep.subr.bf16.mxu0 %v1309_v25  ;;  %613 = vmatprep.subr.bf16.mxu1 %v1311_v26  ;;  %p1479_p10 = pnand %p1478_p1, %p1955_p6  ;;  %s1481_s14 = sshll.u32 %s1584_s24, 4  ;;  %s1482_s14 = int_to_ptr.vmem [resolvable:$false] %s1481_s14 }
  0xb7   : > { %s1483_s10 = scalar_lea.vmem %s1482_s14, 128  ;;  %p1484_p4 = scmp.lt.s32.totalorder %s1875_s18, %s1482_s14 }
  0xb8   : > { %p1480_p3 = pneg %p1479_p10  ;;  %p1485_p9 = scmp.lt.s32.totalorder %s1483_s10, %s1477_s9 }
  0xb9   : > { %493 = vmatpush1.bf16.msra.mxu0 %v1313_v31  ;;  %614 = vmatpush1.bf16.msra.mxu1 %v1314_v32  ;;  %v793_v31 = vsub.s32 0, %v792_v17 }
  0xba   : > { %494 = vmatprep.subr.bf16.mxu0 %v1315_v33  ;;  %615 = vmatprep.subr.bf16.mxu1 %v1317_v36  ;;  %p1486_p5 = por %p1485_p9, %p1484_p4 }
  0xbb   : > { %v794_v32 = vrot.slane %v789_v19, %v793_v31 }
  0xbc   : > { %p1487_p7 = pnand %p1486_p5, %p1480_p3 }
  0xbd   : > { %495 = vmatpush1.bf16.msra.mxu0 %v1319_v37  ;;  %616 = vmatpush1.bf16.msra.mxu1 %v1320_v38  ;;  %v1136_v37 = vld [vmem:[%s1927_s5] ss:$0 sm:$0xff] }
  0xbe   : > { %746 = vmatprep.subr.bf16.mxu0 %v1323_v40  ;;  %1158 = vmatprep.subr.bf16.mxu1 %v1582_v62 }
  0xc0   : > { %513 = vmatmul.mubr.bf16.vlgmr.msra.gmra.mrb[0].mxu0 %v382_v41  ;;  %634 = vmatmul.mubr.bf16.vlgmr.msra.gmra.mrb[0].mxu1 %v354_v27 }
  0xc1   : > { %747 = vmatpush1.bf16.msra.mxu0 %v1321_v42  ;;  %778 = vmatprep.mubr.bf16.mxu0 %v1581_v0  ;;  %v1347_v0 = vld [vmem:[#allocation8 + $0x10] sm:$0xff]  }
  0xc2   : > { %748 = vmatprep.subr.bf16.mxu0 %v1326_v43  ;;  %1159 = vmatpush3.bf16.msra.mxu1 %v1345_v61 }
  0xc3   : > { %1160 = vmatprep.subr.bf16.mxu1 %v1582_v62  ;;  %1174 = vmatprep.mubr.msk.bf16.mxu1 %vm1583_vm2, %v1582_v62 }
  0xc5   : > { %749 = vmatpush1.bf16.msra.mxu0 %v1324_v44 }
  0xc6   : > { %750 = vmatprep.subr.bf16.mxu0 %v1329_v45  ;;  %1161 = vmatpush3.bf16.msra.mxu1 %v1346_v63 }
  0xc7   : > { %1162 = vmatprep.subr.bf16.mxu1 %v1582_v62 }
  0xc9   : > { %751 = vmatpush1.bf16.msra.mxu0 %v1327_v46 }
  0xca   : > { %752 = vmatprep.subr.bf16.mxu0 %v1332_v47  ;;  %1163 = vmatpush3.bf16.msra.mxu1 %v1347_v0 }
  0xcb   : > { %1164 = vmatprep.subr.bf16.mxu1 %v1582_v62 }
  0xcd   : > { %753 = vmatpush1.bf16.msra.mxu0 %v1330_v48 }
  0xce   : > { %754 = vmatprep.subr.bf16.mxu0 %v1335_v49  ;;  %1165 = vmatpush3.bf16.msra.mxu1 %v1348_v1 }
  0xcf   : > { %1166 = vmatprep.subr.bf16.mxu1 %v1582_v62 }
  0xd1   : > { %755 = vmatpush1.bf16.msra.mxu0 %v1333_v50 }
  0xd2   : > { %756 = vmatprep.subr.bf16.mxu0 %v1338_v51  ;;  %1167 = vmatpush3.bf16.msra.mxu1 %v1349_v2 }
  0xd3   : > { %1168 = vmatprep.subr.bf16.mxu1 %v1582_v62 }
  0xd5   : > { %757 = vmatpush1.bf16.msra.mxu0 %v1336_v52 }
  0xd6   : > { %758 = vmatprep.subr.bf16.mxu0 %v1341_v53  ;;  %1169 = vmatpush3.bf16.msra.mxu1 %v1350_v3 }
  0xd7   : > { %1170 = vmatprep.subr.bf16.mxu1 %v1582_v62 }
  0xd9   : > { %759 = vmatpush1.bf16.msra.mxu0 %v1339_v54 }
  0xda   : > { %760 = vmatprep.subr.bf16.mxu0 %v1344_v57  ;;  %1171 = vmatpush3.bf16.msra.mxu1 %v1351_v4 }
  0xdb   : > { %1172 = vmatprep.subr.bf16.mxu1 %v1582_v62 }
  0xdd   : > { %761 = vmatpush1.bf16.msra.mxu0 %v1342_v58 }
  0xde   : > { %1173 = vmatpush3.bf16.msra.mxu1 %v1352_v5 }
  0xe0   : > { %779 = vmatmul.mubr.bf16.vlgmr.msra.gmra.mrb[4].mxu0 %v648_v60 }
 0x193   : > { %v514_v6 = vpop.f32.mrb[0].mxu0  ;;  %v635_v7 = vpop.f32.mrb[0].mxu1 }
 0x194   : > { %v636_v8 = vadd.f32 %v635_v7, %v514_v6  ;;  %v516_v9 = vpop.f32.mrb[1].mxu0  ;;  %v637_v10 = vpop.f32.mrb[1].mxu1 }
 0x195   : > { %v638_v11 = vadd.f32 %v637_v10, %v516_v9  ;;  %v518_v12 = vpop.f32.mrb[2].mxu0  ;;  %v639_v13 = vpop.f32.mrb[2].mxu1 }
 0x196   : > { %v519_v14 = vpop.f32.mrb[3].mxu0  ;;  %v640_v15 = vpop.f32.mrb[3].mxu1 }
 0x1b3   : > { %v780_v20 = vpop.f32.mrb[4].mxu0 }
 0x1b4   : > { %v787_v22 = vadd.f32 %v780_v20, %v636_v8  ;;  %v782_v23 = vpop.f32.mrb[5].mxu0 }
 0x1b5   : > { %v788_v24 = vadd.f32 %v782_v23, %v638_v11  ;;  %v784_v25 = vpop.f32.mrb[6].mxu0 }
 0x1b6   : > { %v785_v26 = vpop.f32.mrb[7].mxu0  ;;  %v801_v33 = vadd.f32 %v794_v32, %v787_v22 }
 0x1b7   : > { %v802_v27 = vadd.f32 %v798_v21, %v788_v24 }
 0x1b9   : > { %v1135_v28 = vmul.f32 -1.442695, %v802_v27 }
 0x1bb   : > { %1353 = vpow2.f32 %v1135_v28 }
 0x1c5   : > { %v1354_v29 = vpop.eup %1353 }
 0x1c6   : > { %v806_v30 = vadd.f32 1.0, %v1354_v29 }
 0x1c8   : > { %1355 = vrcp.f32 %v806_v30 }
 0x1d2   : > { %v1356_v34 = vpop.eup %1355 }
 0x1d3   : > { %v809_v35 = vmul.f32 %v1356_v34, %v801_v33 }
 0x1d5   : > { %v810_v36 = vpack.c.bf16 %v809_v35, %v809_v35 }
 0x1d7   : > { %1175 = vmatmul.mubr.bf16.vlgmr.msra.gmra.mrb[4].mxu1 %v810_v36 }
 0x2aa   : > { %v916_v38 = vpop.f32.mrb[4].mxu1 }
 0x2ab   : > { %v917_v39 = vadd.f32 %v1136_v37, %v916_v38  ;;  %v1176_v40 = vpop.f32.mrb[5].mxu1 }
 0x2ac   : > { %v919_v41 = vpop.f32.mrb[6].mxu1 }
 0x2ad   : > { %922 = vmax.xlane.f32.xlu0 %v917_v39  ;;  %v1177_v42 = vpop.f32.mrb[7].mxu1 }
 0x33a   : > { %v923_v43 = vpop.xlane.xlu0 %922 }
 0x33b   : > { %v924_v44 = vsub.f32 %v917_v39, %v923_v43 }
 0x33d   : > { %v925_v45 = vmul.f32 1.442695, %v924_v44 }
 0x33f   : > { %1357 = vpow2.f32 %v925_v45 }
 0x349   : > { %v1358_v46 = vpop.eup %1357 }
 0x34a   : > { %927 = vadd.xlane.f32.xlu0 %v1358_v46 }
 0x3d7   : > { %v928_v47 = vpop.xlane.xlu0 %927 }
 0x3d8   : > { %1359 = vrcp.f32 %v928_v47 }
 0x3e2   : > { %v1360_v48 = vpop.eup %1359 }
 0x3e3   : > { %v930_v49 = vmul.f32 %v1360_v48, %v1358_v46 }
 0x3e5   : > { %v931_v50 = vpack.c.bf16 %v930_v49, %v930_v49 }
 0x3e7   : > { %932 = vst [vmem:[%s352_s4] sm:$0xf] %v931_v50 }
 0x3e8   : > { %1490 = shalt.err (!%p1487_p7)
}
 0x3e9   : > { %s1491_s2 = scalar_lea.hbm %s1873_s28, 64  ;;  %s1495_s13 = scalar_lea.hbm %s1928_s6, 128 }
 0x3ea   : > { %p1492_p13 = scmp.ne.s32.totalorder %s1873_s28, %s1491_s2  ;;  %p1496_p2 = scmp.lt.u32.totalorder %s1873_s28, %s1928_s6 }
 0x3eb   : > { %p1497_p12 = scmp.lt.u32.totalorder %s1495_s13, %s1491_s2  ;;  %p1499_p1 = scmp.lt.u32.totalorder %s1491_s2, %s1873_s28 }
 0x3ec   : > { %p1493_p8 = pnand %p1492_p13, %p1955_p6 }
 0x3ed   : > { %p1498_p0 = por %p1497_p12, %p1496_p2 }
 0x3ee   : > { %p1494_p11 = pneg %p1493_p8 }
 0x3ef   : > { %p1500_p10 = por %p1499_p1, %p1498_p0 }
 0x3f1   : > { %p1501_p3 = pnand %p1500_p10, %p1494_p11 }
 0x3f3   : > { %1504 = shalt.err (!%p1501_p3)
}
 0x3f4   : > { %1190 = dma.vmem_to_hbm [thread:$0]  (%p1955_p6), %s1875_s18, 64, %s1873_s28, %s934_s11  }
 0x3f5 PF: > { %s960_s29 = sand.u32 1, %s1551_s21   ;;  %p1956_p4 = scmp.ne.s32.totalorder %s1939_s30, 0 }
 0x3f6   : > { %p1957_p9 = scmp.ge.s32.totalorder %s1571_s26, 2  ;;  %s961_s19 = scalar_lea.sflag [#allocation4], %s960_s29 }
 0x3f8   : > { %p1207_p5 = pnand %p1957_p9, %p1956_p4 }
 0x3fa   : > { %1546 = dma.done.wait (!%p1207_p5), %s961_s19, 64  }
 0x3fb   : > { %1548 = vsyncadd (!%p1207_p5), %s961_s19, 4294967232  ;;  %s26_s26 = sadd.s32 1, %s1571_s26   ;;  %s1958_s16 = sld [smem:[#allocation18_spill]] }
 0x3fc   : > { %p23_p7 = scmp.ge.s32.totalorder %s26_s26, 4   ;;  %s1959_s24 = sld [smem:[#allocation16_spill]] }
 0x3fd   : > { %s1960_s25 = sld [smem:[#allocation17_spill]]  ;;  %s1961_s21 = smov %s1555_s22 }
 0x3fe   : > { %s1962_s22 = smov %s1559_s23  ;;  %25 = sbr.rel (!%p23_p7) target bundleno = 12 (0xc), region = 112 }
 0x401   : > { %s1963_s23 = smov %s1958_s16 }
 0x405   :  { %966 = vsyncpa [#allocation3], 1 }
 0x406   :  { %968 = vsyncpa [#allocation3 + $0x1], 1 }
 0x407   :  { %969 = vsyncpa [#allocation6], 1 }
 0x408   :  { %971 = vsyncpa [#allocation6 + $0x1], 1 }
 0x409   :  { %972 = vsyncpa [#allocation9], 1 }
 0x40a   :  { %973 = vsyncpa [#allocation4], 1 }
 0x40b   :  { %975 = vsyncpa [#allocation4 + $0x1], 1 }

</bundles_post_ra>
